<compile_context>
chip_gen: v5e
topology: v5e:2x2
jax: 0.10.0
libtpu: 0.0.40
codegen_flags: <defaults>
</compile_context>

<pallas_src>
import jax
import jax.numpy as jnp
from jax.experimental import pallas as pl
from jax.experimental.pallas import tpu as pltpu


# ----------------------------------------------------------------------------
# In-kernel helpers
# ----------------------------------------------------------------------------
def _gru_recurrence(gx, whh_ref, bhh_ref, T, B, H, out_ref=None):
    """Fully unrolled GRU recurrence.

    gx      : (T*B, 3H) value = x @ W_ih_all + b_ih_all, gate order [r|z|n]
    whh_ref : (H, 3H) ref,  bhh_ref : (1, 3H) ref
    If out_ref is given (shape (T, B, H)), per-step hidden states are stored.
    Returns the final hidden state (B, H).
    """
    whh = whh_ref[...]
    bhh = bhh_ref[...]
    h = jnp.zeros((B, H), jnp.float32)
    for t in range(T):                       # T static & small -> full unroll
        gx_t = gx[t * B:(t + 1) * B, :]      # (B, 3H), static slice
        gh = jnp.dot(h, whh, preferred_element_type=jnp.float32) + bhh
        r = jax.nn.sigmoid(gx_t[:, 0:H] + gh[:, 0:H])
        z = jax.nn.sigmoid(gx_t[:, H:2 * H] + gh[:, H:2 * H])
        n = jnp.tanh(gx_t[:, 2 * H:] + r * gh[:, 2 * H:])
        h = (1.0 - z) * n + z * h
        if out_ref is not None:
            out_ref[t] = h
    return h


# ----------------------------------------------------------------------------
# Pallas kernels
# ----------------------------------------------------------------------------
def gru_layer_kernel(x_ref, wih_ref, bih_ref, whh_ref, bhh_ref, out_ref):
    """One GRU layer: hoisted input projection + unrolled recurrence.

    x_ref:(T*B, D_in)  wih:(D_in, 3H)  bih:(1, 3H)  whh:(H, 3H)  bhh:(1, 3H)
    out_ref:(T, B, H)  -- hidden state at every time step.
    """
    T, B, H = out_ref.shape
    gx = jnp.dot(x_ref[...], wih_ref[...],
                 preferred_element_type=jnp.float32) + bih_ref[...]
    _gru_recurrence(gx, whh_ref, bhh_ref, T, B, H, out_ref=out_ref)


def gru_head_kernel(x_ref, wih_ref, bih_ref, whh_ref, bhh_ref,
                    fcw_ref, fcb_ref, probs_ref):
    """Last GRU layer fused with fc_output + softmax(dim=1).

    Only the final hidden state is needed downstream, so no (T,B,H) output.
    probs_ref:(B, C)
    """
    B, _ = probs_ref.shape
    H = whh_ref.shape[0]
    T = x_ref.shape[0] // B
    gx = jnp.dot(x_ref[...], wih_ref[...],
                 preferred_element_type=jnp.float32) + bih_ref[...]
    h = _gru_recurrence(gx, whh_ref, bhh_ref, T, B, H)
    logits = jnp.dot(h, fcw_ref[...],
                     preferred_element_type=jnp.float32) + fcb_ref[...]
    m = jnp.max(logits, axis=1, keepdims=True)
    e = jnp.exp(logits - m)
    probs_ref[...] = e / jnp.sum(e, axis=1, keepdims=True)


# ----------------------------------------------------------------------------
# Pallas wrappers
# ----------------------------------------------------------------------------
def gru_layer(x2d, wih, bih, whh, bhh, T):
    TB, D = x2d.shape
    B = TB // T
    H = whh.shape[0]
    G = 3 * H
    return pl.pallas_call(
        gru_layer_kernel,
        out_shape=jax.ShapeDtypeStruct((T, B, H), jnp.float32),
        grid_spec=pltpu.PrefetchScalarGridSpec(
            num_scalar_prefetch=0,
            grid=(1,),
            in_specs=[
                pl.BlockSpec((TB, D), lambda i: (0, 0)),
                pl.BlockSpec((D, G), lambda i: (0, 0)),
                pl.BlockSpec((1, G), lambda i: (0, 0)),
                pl.BlockSpec((H, G), lambda i: (0, 0)),
                pl.BlockSpec((1, G), lambda i: (0, 0)),
            ],
            out_specs=pl.BlockSpec((T, B, H), lambda i: (0, 0, 0)),
        ),
        compiler_params=pltpu.CompilerParams(
            dimension_semantics=("arbitrary",)),
    )(x2d, wih, bih, whh, bhh)


def gru_layer_head(x2d, wih, bih, whh, bhh, fc_w, fc_b, T):
    TB, D = x2d.shape
    B = TB // T
    H = whh.shape[0]
    C = fc_w.shape[1]
    G = 3 * H
    return pl.pallas_call(
        gru_head_kernel,
        out_shape=jax.ShapeDtypeStruct((B, C), jnp.float32),
        grid_spec=pltpu.PrefetchScalarGridSpec(
            num_scalar_prefetch=0,
            grid=(1,),
            in_specs=[
                pl.BlockSpec((TB, D), lambda i: (0, 0)),
                pl.BlockSpec((D, G), lambda i: (0, 0)),
                pl.BlockSpec((1, G), lambda i: (0, 0)),
                pl.BlockSpec((H, G), lambda i: (0, 0)),
                pl.BlockSpec((1, G), lambda i: (0, 0)),
                pl.BlockSpec((H, C), lambda i: (0, 0)),
                pl.BlockSpec((1, C), lambda i: (0, 0)),
            ],
            out_specs=pl.BlockSpec((B, C), lambda i: (0, 0)),
        ),
        compiler_params=pltpu.CompilerParams(
            dimension_semantics=("arbitrary",)),
    )(x2d, wih, bih, whh, bhh, fc_w, fc_b)


# ----------------------------------------------------------------------------
# Model forward (Pallas)
# ----------------------------------------------------------------------------
def gru_forward(params, inp):
    # Embedding lookup (gather) kept as plain-JAX glue.
    x = jnp.take(params["emb"], inp, axis=0)          # (B, T, D)
    x = jnp.transpose(x, (1, 0, 2))                   # (T, B, D) time-major
    T, B, D = x.shape
    h_in = x.reshape(T * B, D)

    layers = params["gru"]
    for lp in layers[:-1]:
        out = gru_layer(h_in, lp["wih"], lp["bih"], lp["whh"], lp["bhh"], T)
        h_in = out.reshape(T * B, out.shape[-1])

    lp = layers[-1]
    return gru_layer_head(h_in, lp["wih"], lp["bih"], lp["whh"], lp["bhh"],
                          params["fc_w"], params["fc_b"], T)      # (B, C)


# ----------------------------------------------------------------------------
# Pure-JAX reference (numerical verification)
# ----------------------------------------------------------------------------
def gru_forward_ref(params, inp):
    x = jnp.take(params["emb"], inp, axis=0)
    x = jnp.transpose(x, (1, 0, 2))                   # (T, B, D)
    B = x.shape[1]
    h_seq = x
    for lp in params["gru"]:
        H = lp["whh"].shape[0]

        def step(h, x_t, lp=lp, H=H):
            gx = x_t @ lp["wih"] + lp["bih"]
            gh = h @ lp["whh"] + lp["bhh"]
            r = jax.nn.sigmoid(gx[:, 0:H] + gh[:, 0:H])
            z = jax.nn.sigmoid(gx[:, H:2 * H] + gh[:, H:2 * H])
            n = jnp.tanh(gx[:, 2 * H:] + r * gh[:, 2 * H:])
            h_new = (1.0 - z) * n + z * h
            return h_new, h_new

        h0 = jnp.zeros((B, H), jnp.float32)
        _, h_seq = jax.lax.scan(step, h0, h_seq)
    last = h_seq[-1]
    logits = last @ params["fc_w"] + params["fc_b"]
    return jax.nn.softmax(logits, axis=1)


# ----------------------------------------------------------------------------
# Deterministic parameter init
# ----------------------------------------------------------------------------
def init_params(key, *, vocab_size, word_dim, hidden, num_layers, num_classes):
    keys = iter(jax.random.split(key, 3 + 4 * num_layers))

    emb = 0.1 * jax.random.normal(next(keys), (vocab_size + 2, word_dim),
                                  jnp.float32)
    emb = emb.at[vocab_size + 1].set(0.0)   # padding_idx row -> zeros

    layers = []
    for layer in range(num_layers):
        d_in = word_dim if layer == 0 else hidden
        layers.append({
            "wih": 0.1 * jax.random.normal(next(keys), (d_in, 3 * hidden),
                                           jnp.float32),
            "whh": 0.1 * jax.random.normal(next(keys), (hidden, 3 * hidden),
                                           jnp.float32),
            "bih": 0.1 * jax.random.normal(next(keys), (1, 3 * hidden),
                                           jnp.float32),
            "bhh": 0.1 * jax.random.normal(next(keys), (1, 3 * hidden),
                                           jnp.float32),
        })

    fc_w = 0.1 * jax.random.normal(next(keys), (hidden, num_classes),
                                   jnp.float32)
    fc_b = 0.1 * jax.random.normal(next(keys), (1, num_classes), jnp.float32)

    return {"emb": emb, "gru": layers, "fc_w": fc_w, "fc_b": fc_b}


# ----------------------------------------------------------------------------
if __name__ == "__main__":
    BATCH = 2
    SEQ = 8            # MAX_SENT_LEN
    WORD_DIM = 16
    HIDDEN = 32
    NUM_LAYERS = 2
    VOCAB = 20
    CLASSES = 3

    root = jax.random.PRNGKey(0)
    k_inp, k_par = jax.random.split(root)

    inp = jax.random.randint(k_inp, (BATCH, SEQ), 0, VOCAB, dtype=jnp.int32)
    params = init_params(k_par, vocab_size=VOCAB, word_dim=WORD_DIM,
                         hidden=HIDDEN, num_layers=NUM_LAYERS,
                         num_classes=CLASSES)

    fwd = jax.jit(gru_forward)
    probs = jax.block_until_ready(fwd(params, inp))

    with jax.default_matmul_precision("float32"):
        ref = jax.block_until_ready(gru_forward_ref(params, inp))

    assert probs.shape == (BATCH, CLASSES)
    assert jnp.allclose(jnp.sum(probs, axis=1), 1.0, atol=1e-5)
    assert jnp.allclose(probs, ref, rtol=2e-5, atol=2e-5), "mismatch vs reference"

    print("KERNEL_OK")
</pallas_src>

<mosaic_0001>
module attributes {stable_mosaic.version = 11 : i64} {
  func.func @gru_head_kernel(%arg0: i32, %arg1: memref<16x32xf32, #tpu.memory_space<vmem>>, %arg2: memref<32x96xf32, #tpu.memory_space<vmem>>, %arg3: memref<1x96xf32, #tpu.memory_space<vmem>>, %arg4: memref<32x96xf32, #tpu.memory_space<vmem>>, %arg5: memref<1x96xf32, #tpu.memory_space<vmem>>, %arg6: memref<32x3xf32, #tpu.memory_space<vmem>>, %arg7: memref<1x3xf32, #tpu.memory_space<vmem>>, %arg8: memref<2x3xf32, #tpu.memory_space<vmem>>) attributes {dimension_semantics = [#tpu.dimension_semantics<arbitrary>], iteration_bounds = array<i64: 1>, scalar_prefetch = 0 : i64, scratch_operands = 0 : i64, tpu.core_type = #tpu.core_type<tc>, window_params = [{pipeline_mode = #tpu.pipeline_mode<synchronous>, transform_indices = @transform_0, window_bounds = array<i64: 16, 32>}, {pipeline_mode = #tpu.pipeline_mode<synchronous>, transform_indices = @transform_1, window_bounds = array<i64: 32, 96>}, {pipeline_mode = #tpu.pipeline_mode<synchronous>, transform_indices = @transform_2, window_bounds = array<i64: 1, 96>}, {pipeline_mode = #tpu.pipeline_mode<synchronous>, transform_indices = @transform_3, window_bounds = array<i64: 32, 96>}, {pipeline_mode = #tpu.pipeline_mode<synchronous>, transform_indices = @transform_4, window_bounds = array<i64: 1, 96>}, {pipeline_mode = #tpu.pipeline_mode<synchronous>, transform_indices = @transform_5, window_bounds = array<i64: 32, 3>}, {pipeline_mode = #tpu.pipeline_mode<synchronous>, transform_indices = @transform_6, window_bounds = array<i64: 1, 3>}, {pipeline_mode = #tpu.pipeline_mode<synchronous>, transform_indices = @transform_7, window_bounds = array<i64: 2, 3>}]} {
    %c0 = arith.constant 0 : index
    %c0_0 = arith.constant 0 : index
    %0 = vector.load %arg1[%c0, %c0_0] : memref<16x32xf32, #tpu.memory_space<vmem>>, vector<16x32xf32>
    %c0_1 = arith.constant 0 : index
    %c0_2 = arith.constant 0 : index
    %1 = vector.load %arg2[%c0_1, %c0_2] : memref<32x96xf32, #tpu.memory_space<vmem>>, vector<32x96xf32>
    %cst = arith.constant dense<0.000000e+00> : vector<16x96xf32>
    %2 = tpu.matmul %0, %1, %cst {dimension_numbers = #tpu.dot_dimension_numbers<[1], [0], [0], [1], [0, 0, 1, 1], [], []>} : vector<16x32xf32>, vector<32x96xf32>, vector<16x96xf32> -> vector<16x96xf32>
    %c0_3 = arith.constant 0 : index
    %c0_4 = arith.constant 0 : index
    %3 = vector.load %arg3[%c0_3, %c0_4] : memref<1x96xf32, #tpu.memory_space<vmem>>, vector<1x96xf32>
    %4 = vector.broadcast %3 : vector<1x96xf32> to vector<16x96xf32>
    %5 = arith.addf %2, %4 : vector<16x96xf32>
    %c0_5 = arith.constant 0 : index
    %c0_6 = arith.constant 0 : index
    %6 = vector.load %arg4[%c0_5, %c0_6] : memref<32x96xf32, #tpu.memory_space<vmem>>, vector<32x96xf32>
    %c0_7 = arith.constant 0 : index
    %c0_8 = arith.constant 0 : index
    %7 = vector.load %arg5[%c0_7, %c0_8] : memref<1x96xf32, #tpu.memory_space<vmem>>, vector<1x96xf32>
    %cst_9 = arith.constant 0.000000e+00 : f32
    %8 = vector.broadcast %cst_9 : f32 to vector<2x32xf32>
    %9 = vector.extract_strided_slice %5 {offsets = [0, 0], sizes = [2, 96], strides = [1, 1]} : vector<16x96xf32> to vector<2x96xf32>
    %cst_10 = arith.constant dense<0.000000e+00> : vector<2x96xf32>
    %10 = tpu.matmul %8, %6, %cst_10 {dimension_numbers = #tpu.dot_dimension_numbers<[1], [0], [0], [1], [0, 0, 1, 1], [], []>} : vector<2x32xf32>, vector<32x96xf32>, vector<2x96xf32> -> vector<2x96xf32>
    %11 = vector.broadcast %7 : vector<1x96xf32> to vector<2x96xf32>
    %12 = arith.addf %10, %11 : vector<2x96xf32>
    %13 = vector.extract_strided_slice %9 {offsets = [0, 0], sizes = [2, 32], strides = [1, 1]} : vector<2x96xf32> to vector<2x32xf32>
    %14 = vector.extract_strided_slice %12 {offsets = [0, 0], sizes = [2, 32], strides = [1, 1]} : vector<2x96xf32> to vector<2x32xf32>
    %15 = arith.addf %13, %14 : vector<2x32xf32>
    %16 = arith.negf %15 : vector<2x32xf32>
    %17 = math.exp %16 : vector<2x32xf32>
    %cst_11 = arith.constant 1.000000e+00 : f32
    %18 = vector.broadcast %cst_11 : f32 to vector<2x32xf32>
    %19 = arith.addf %18, %17 : vector<2x32xf32>
    %20 = arith.divf %18, %19 : vector<2x32xf32>
    %21 = vector.extract_strided_slice %9 {offsets = [0, 32], sizes = [2, 32], strides = [1, 1]} : vector<2x96xf32> to vector<2x32xf32>
    %22 = vector.extract_strided_slice %12 {offsets = [0, 32], sizes = [2, 32], strides = [1, 1]} : vector<2x96xf32> to vector<2x32xf32>
    %23 = arith.addf %21, %22 : vector<2x32xf32>
    %24 = arith.negf %23 : vector<2x32xf32>
    %25 = math.exp %24 : vector<2x32xf32>
    %cst_12 = arith.constant 1.000000e+00 : f32
    %26 = vector.broadcast %cst_12 : f32 to vector<2x32xf32>
    %27 = arith.addf %26, %25 : vector<2x32xf32>
    %28 = arith.divf %26, %27 : vector<2x32xf32>
    %29 = vector.extract_strided_slice %9 {offsets = [0, 64], sizes = [2, 32], strides = [1, 1]} : vector<2x96xf32> to vector<2x32xf32>
    %30 = vector.extract_strided_slice %12 {offsets = [0, 64], sizes = [2, 32], strides = [1, 1]} : vector<2x96xf32> to vector<2x32xf32>
    %31 = arith.mulf %20, %30 : vector<2x32xf32>
    %32 = arith.addf %29, %31 : vector<2x32xf32>
    %33 = math.tanh %32 : vector<2x32xf32>
    %cst_13 = arith.constant 1.000000e+00 : f32
    %34 = vector.broadcast %cst_13 : f32 to vector<2x32xf32>
    %35 = arith.subf %34, %28 : vector<2x32xf32>
    %36 = arith.mulf %35, %33 : vector<2x32xf32>
    %37 = arith.mulf %28, %8 : vector<2x32xf32>
    %38 = arith.addf %36, %37 : vector<2x32xf32>
    %39 = vector.extract_strided_slice %5 {offsets = [2, 0], sizes = [2, 96], strides = [1, 1]} : vector<16x96xf32> to vector<2x96xf32>
    %cst_14 = arith.constant dense<0.000000e+00> : vector<2x96xf32>
    %40 = tpu.matmul %38, %6, %cst_14 {dimension_numbers = #tpu.dot_dimension_numbers<[1], [0], [0], [1], [0, 0, 1, 1], [], []>} : vector<2x32xf32>, vector<32x96xf32>, vector<2x96xf32> -> vector<2x96xf32>
    %41 = vector.broadcast %7 : vector<1x96xf32> to vector<2x96xf32>
    %42 = arith.addf %40, %41 : vector<2x96xf32>
    %43 = vector.extract_strided_slice %39 {offsets = [0, 0], sizes = [2, 32], strides = [1, 1]} : vector<2x96xf32> to vector<2x32xf32>
    %44 = vector.extract_strided_slice %42 {offsets = [0, 0], sizes = [2, 32], strides = [1, 1]} : vector<2x96xf32> to vector<2x32xf32>
    %45 = arith.addf %43, %44 : vector<2x32xf32>
    %46 = arith.negf %45 : vector<2x32xf32>
    %47 = math.exp %46 : vector<2x32xf32>
    %cst_15 = arith.constant 1.000000e+00 : f32
    %48 = vector.broadcast %cst_15 : f32 to vector<2x32xf32>
    %49 = arith.addf %48, %47 : vector<2x32xf32>
    %50 = arith.divf %48, %49 : vector<2x32xf32>
    %51 = vector.extract_strided_slice %39 {offsets = [0, 32], sizes = [2, 32], strides = [1, 1]} : vector<2x96xf32> to vector<2x32xf32>
    %52 = vector.extract_strided_slice %42 {offsets = [0, 32], sizes = [2, 32], strides = [1, 1]} : vector<2x96xf32> to vector<2x32xf32>
    %53 = arith.addf %51, %52 : vector<2x32xf32>
    %54 = arith.negf %53 : vector<2x32xf32>
    %55 = math.exp %54 : vector<2x32xf32>
    %cst_16 = arith.constant 1.000000e+00 : f32
    %56 = vector.broadcast %cst_16 : f32 to vector<2x32xf32>
    %57 = arith.addf %56, %55 : vector<2x32xf32>
    %58 = arith.divf %56, %57 : vector<2x32xf32>
    %59 = vector.extract_strided_slice %39 {offsets = [0, 64], sizes = [2, 32], strides = [1, 1]} : vector<2x96xf32> to vector<2x32xf32>
    %60 = vector.extract_strided_slice %42 {offsets = [0, 64], sizes = [2, 32], strides = [1, 1]} : vector<2x96xf32> to vector<2x32xf32>
    %61 = arith.mulf %50, %60 : vector<2x32xf32>
    %62 = arith.addf %59, %61 : vector<2x32xf32>
    %63 = math.tanh %62 : vector<2x32xf32>
    %cst_17 = arith.constant 1.000000e+00 : f32
    %64 = vector.broadcast %cst_17 : f32 to vector<2x32xf32>
    %65 = arith.subf %64, %58 : vector<2x32xf32>
    %66 = arith.mulf %65, %63 : vector<2x32xf32>
    %67 = arith.mulf %58, %38 : vector<2x32xf32>
    %68 = arith.addf %66, %67 : vector<2x32xf32>
    %69 = vector.extract_strided_slice %5 {offsets = [4, 0], sizes = [2, 96], strides = [1, 1]} : vector<16x96xf32> to vector<2x96xf32>
    %cst_18 = arith.constant dense<0.000000e+00> : vector<2x96xf32>
    %70 = tpu.matmul %68, %6, %cst_18 {dimension_numbers = #tpu.dot_dimension_numbers<[1], [0], [0], [1], [0, 0, 1, 1], [], []>} : vector<2x32xf32>, vector<32x96xf32>, vector<2x96xf32> -> vector<2x96xf32>
    %71 = vector.broadcast %7 : vector<1x96xf32> to vector<2x96xf32>
    %72 = arith.addf %70, %71 : vector<2x96xf32>
    %73 = vector.extract_strided_slice %69 {offsets = [0, 0], sizes = [2, 32], strides = [1, 1]} : vector<2x96xf32> to vector<2x32xf32>
    %74 = vector.extract_strided_slice %72 {offsets = [0, 0], sizes = [2, 32], strides = [1, 1]} : vector<2x96xf32> to vector<2x32xf32>
    %75 = arith.addf %73, %74 : vector<2x32xf32>
    %76 = arith.negf %75 : vector<2x32xf32>
    %77 = math.exp %76 : vector<2x32xf32>
    %cst_19 = arith.constant 1.000000e+00 : f32
    %78 = vector.broadcast %cst_19 : f32 to vector<2x32xf32>
    %79 = arith.addf %78, %77 : vector<2x32xf32>
    %80 = arith.divf %78, %79 : vector<2x32xf32>
    %81 = vector.extract_strided_slice %69 {offsets = [0, 32], sizes = [2, 32], strides = [1, 1]} : vector<2x96xf32> to vector<2x32xf32>
    %82 = vector.extract_strided_slice %72 {offsets = [0, 32], sizes = [2, 32], strides = [1, 1]} : vector<2x96xf32> to vector<2x32xf32>
    %83 = arith.addf %81, %82 : vector<2x32xf32>
    %84 = arith.negf %83 : vector<2x32xf32>
    %85 = math.exp %84 : vector<2x32xf32>
    %cst_20 = arith.constant 1.000000e+00 : f32
    %86 = vector.broadcast %cst_20 : f32 to vector<2x32xf32>
    %87 = arith.addf %86, %85 : vector<2x32xf32>
    %88 = arith.divf %86, %87 : vector<2x32xf32>
    %89 = vector.extract_strided_slice %69 {offsets = [0, 64], sizes = [2, 32], strides = [1, 1]} : vector<2x96xf32> to vector<2x32xf32>
    %90 = vector.extract_strided_slice %72 {offsets = [0, 64], sizes = [2, 32], strides = [1, 1]} : vector<2x96xf32> to vector<2x32xf32>
    %91 = arith.mulf %80, %90 : vector<2x32xf32>
    %92 = arith.addf %89, %91 : vector<2x32xf32>
    %93 = math.tanh %92 : vector<2x32xf32>
    %cst_21 = arith.constant 1.000000e+00 : f32
    %94 = vector.broadcast %cst_21 : f32 to vector<2x32xf32>
    %95 = arith.subf %94, %88 : vector<2x32xf32>
    %96 = arith.mulf %95, %93 : vector<2x32xf32>
    %97 = arith.mulf %88, %68 : vector<2x32xf32>
    %98 = arith.addf %96, %97 : vector<2x32xf32>
    %99 = vector.extract_strided_slice %5 {offsets = [6, 0], sizes = [2, 96], strides = [1, 1]} : vector<16x96xf32> to vector<2x96xf32>
    %cst_22 = arith.constant dense<0.000000e+00> : vector<2x96xf32>
    %100 = tpu.matmul %98, %6, %cst_22 {dimension_numbers = #tpu.dot_dimension_numbers<[1], [0], [0], [1], [0, 0, 1, 1], [], []>} : vector<2x32xf32>, vector<32x96xf32>, vector<2x96xf32> -> vector<2x96xf32>
    %101 = vector.broadcast %7 : vector<1x96xf32> to vector<2x96xf32>
    %102 = arith.addf %100, %101 : vector<2x96xf32>
    %103 = vector.extract_strided_slice %99 {offsets = [0, 0], sizes = [2, 32], strides = [1, 1]} : vector<2x96xf32> to vector<2x32xf32>
    %104 = vector.extract_strided_slice %102 {offsets = [0, 0], sizes = [2, 32], strides = [1, 1]} : vector<2x96xf32> to vector<2x32xf32>
    %105 = arith.addf %103, %104 : vector<2x32xf32>
    %106 = arith.negf %105 : vector<2x32xf32>
    %107 = math.exp %106 : vector<2x32xf32>
    %cst_23 = arith.constant 1.000000e+00 : f32
    %108 = vector.broadcast %cst_23 : f32 to vector<2x32xf32>
    %109 = arith.addf %108, %107 : vector<2x32xf32>
    %110 = arith.divf %108, %109 : vector<2x32xf32>
    %111 = vector.extract_strided_slice %99 {offsets = [0, 32], sizes = [2, 32], strides = [1, 1]} : vector<2x96xf32> to vector<2x32xf32>
    %112 = vector.extract_strided_slice %102 {offsets = [0, 32], sizes = [2, 32], strides = [1, 1]} : vector<2x96xf32> to vector<2x32xf32>
    %113 = arith.addf %111, %112 : vector<2x32xf32>
    %114 = arith.negf %113 : vector<2x32xf32>
    %115 = math.exp %114 : vector<2x32xf32>
    %cst_24 = arith.constant 1.000000e+00 : f32
    %116 = vector.broadcast %cst_24 : f32 to vector<2x32xf32>
    %117 = arith.addf %116, %115 : vector<2x32xf32>
    %118 = arith.divf %116, %117 : vector<2x32xf32>
    %119 = vector.extract_strided_slice %99 {offsets = [0, 64], sizes = [2, 32], strides = [1, 1]} : vector<2x96xf32> to vector<2x32xf32>
    %120 = vector.extract_strided_slice %102 {offsets = [0, 64], sizes = [2, 32], strides = [1, 1]} : vector<2x96xf32> to vector<2x32xf32>
    %121 = arith.mulf %110, %120 : vector<2x32xf32>
    %122 = arith.addf %119, %121 : vector<2x32xf32>
    %123 = math.tanh %122 : vector<2x32xf32>
    %cst_25 = arith.constant 1.000000e+00 : f32
    %124 = vector.broadcast %cst_25 : f32 to vector<2x32xf32>
    %125 = arith.subf %124, %118 : vector<2x32xf32>
    %126 = arith.mulf %125, %123 : vector<2x32xf32>
    %127 = arith.mulf %118, %98 : vector<2x32xf32>
    %128 = arith.addf %126, %127 : vector<2x32xf32>
    %129 = vector.extract_strided_slice %5 {offsets = [8, 0], sizes = [2, 96], strides = [1, 1]} : vector<16x96xf32> to vector<2x96xf32>
    %cst_26 = arith.constant dense<0.000000e+00> : vector<2x96xf32>
    %130 = tpu.matmul %128, %6, %cst_26 {dimension_numbers = #tpu.dot_dimension_numbers<[1], [0], [0], [1], [0, 0, 1, 1], [], []>} : vector<2x32xf32>, vector<32x96xf32>, vector<2x96xf32> -> vector<2x96xf32>
    %131 = vector.broadcast %7 : vector<1x96xf32> to vector<2x96xf32>
    %132 = arith.addf %130, %131 : vector<2x96xf32>
    %133 = vector.extract_strided_slice %129 {offsets = [0, 0], sizes = [2, 32], strides = [1, 1]} : vector<2x96xf32> to vector<2x32xf32>
    %134 = vector.extract_strided_slice %132 {offsets = [0, 0], sizes = [2, 32], strides = [1, 1]} : vector<2x96xf32> to vector<2x32xf32>
    %135 = arith.addf %133, %134 : vector<2x32xf32>
    %136 = arith.negf %135 : vector<2x32xf32>
    %137 = math.exp %136 : vector<2x32xf32>
    %cst_27 = arith.constant 1.000000e+00 : f32
    %138 = vector.broadcast %cst_27 : f32 to vector<2x32xf32>
    %139 = arith.addf %138, %137 : vector<2x32xf32>
    %140 = arith.divf %138, %139 : vector<2x32xf32>
    %141 = vector.extract_strided_slice %129 {offsets = [0, 32], sizes = [2, 32], strides = [1, 1]} : vector<2x96xf32> to vector<2x32xf32>
    %142 = vector.extract_strided_slice %132 {offsets = [0, 32], sizes = [2, 32], strides = [1, 1]} : vector<2x96xf32> to vector<2x32xf32>
    %143 = arith.addf %141, %142 : vector<2x32xf32>
    %144 = arith.negf %143 : vector<2x32xf32>
    %145 = math.exp %144 : vector<2x32xf32>
    %cst_28 = arith.constant 1.000000e+00 : f32
    %146 = vector.broadcast %cst_28 : f32 to vector<2x32xf32>
    %147 = arith.addf %146, %145 : vector<2x32xf32>
    %148 = arith.divf %146, %147 : vector<2x32xf32>
    %149 = vector.extract_strided_slice %129 {offsets = [0, 64], sizes = [2, 32], strides = [1, 1]} : vector<2x96xf32> to vector<2x32xf32>
    %150 = vector.extract_strided_slice %132 {offsets = [0, 64], sizes = [2, 32], strides = [1, 1]} : vector<2x96xf32> to vector<2x32xf32>
    %151 = arith.mulf %140, %150 : vector<2x32xf32>
    %152 = arith.addf %149, %151 : vector<2x32xf32>
    %153 = math.tanh %152 : vector<2x32xf32>
    %cst_29 = arith.constant 1.000000e+00 : f32
    %154 = vector.broadcast %cst_29 : f32 to vector<2x32xf32>
    %155 = arith.subf %154, %148 : vector<2x32xf32>
    %156 = arith.mulf %155, %153 : vector<2x32xf32>
    %157 = arith.mulf %148, %128 : vector<2x32xf32>
    %158 = arith.addf %156, %157 : vector<2x32xf32>
    %159 = vector.extract_strided_slice %5 {offsets = [10, 0], sizes = [2, 96], strides = [1, 1]} : vector<16x96xf32> to vector<2x96xf32>
    %cst_30 = arith.constant dense<0.000000e+00> : vector<2x96xf32>
    %160 = tpu.matmul %158, %6, %cst_30 {dimension_numbers = #tpu.dot_dimension_numbers<[1], [0], [0], [1], [0, 0, 1, 1], [], []>} : vector<2x32xf32>, vector<32x96xf32>, vector<2x96xf32> -> vector<2x96xf32>
    %161 = vector.broadcast %7 : vector<1x96xf32> to vector<2x96xf32>
    %162 = arith.addf %160, %161 : vector<2x96xf32>
    %163 = vector.extract_strided_slice %159 {offsets = [0, 0], sizes = [2, 32], strides = [1, 1]} : vector<2x96xf32> to vector<2x32xf32>
    %164 = vector.extract_strided_slice %162 {offsets = [0, 0], sizes = [2, 32], strides = [1, 1]} : vector<2x96xf32> to vector<2x32xf32>
    %165 = arith.addf %163, %164 : vector<2x32xf32>
    %166 = arith.negf %165 : vector<2x32xf32>
    %167 = math.exp %166 : vector<2x32xf32>
    %cst_31 = arith.constant 1.000000e+00 : f32
    %168 = vector.broadcast %cst_31 : f32 to vector<2x32xf32>
    %169 = arith.addf %168, %167 : vector<2x32xf32>
    %170 = arith.divf %168, %169 : vector<2x32xf32>
    %171 = vector.extract_strided_slice %159 {offsets = [0, 32], sizes = [2, 32], strides = [1, 1]} : vector<2x96xf32> to vector<2x32xf32>
    %172 = vector.extract_strided_slice %162 {offsets = [0, 32], sizes = [2, 32], strides = [1, 1]} : vector<2x96xf32> to vector<2x32xf32>
    %173 = arith.addf %171, %172 : vector<2x32xf32>
    %174 = arith.negf %173 : vector<2x32xf32>
    %175 = math.exp %174 : vector<2x32xf32>
    %cst_32 = arith.constant 1.000000e+00 : f32
    %176 = vector.broadcast %cst_32 : f32 to vector<2x32xf32>
    %177 = arith.addf %176, %175 : vector<2x32xf32>
    %178 = arith.divf %176, %177 : vector<2x32xf32>
    %179 = vector.extract_strided_slice %159 {offsets = [0, 64], sizes = [2, 32], strides = [1, 1]} : vector<2x96xf32> to vector<2x32xf32>
    %180 = vector.extract_strided_slice %162 {offsets = [0, 64], sizes = [2, 32], strides = [1, 1]} : vector<2x96xf32> to vector<2x32xf32>
    %181 = arith.mulf %170, %180 : vector<2x32xf32>
    %182 = arith.addf %179, %181 : vector<2x32xf32>
    %183 = math.tanh %182 : vector<2x32xf32>
    %cst_33 = arith.constant 1.000000e+00 : f32
    %184 = vector.broadcast %cst_33 : f32 to vector<2x32xf32>
    %185 = arith.subf %184, %178 : vector<2x32xf32>
    %186 = arith.mulf %185, %183 : vector<2x32xf32>
    %187 = arith.mulf %178, %158 : vector<2x32xf32>
    %188 = arith.addf %186, %187 : vector<2x32xf32>
    %189 = vector.extract_strided_slice %5 {offsets = [12, 0], sizes = [2, 96], strides = [1, 1]} : vector<16x96xf32> to vector<2x96xf32>
    %cst_34 = arith.constant dense<0.000000e+00> : vector<2x96xf32>
    %190 = tpu.matmul %188, %6, %cst_34 {dimension_numbers = #tpu.dot_dimension_numbers<[1], [0], [0], [1], [0, 0, 1, 1], [], []>} : vector<2x32xf32>, vector<32x96xf32>, vector<2x96xf32> -> vector<2x96xf32>
    %191 = vector.broadcast %7 : vector<1x96xf32> to vector<2x96xf32>
    %192 = arith.addf %190, %191 : vector<2x96xf32>
    %193 = vector.extract_strided_slice %189 {offsets = [0, 0], sizes = [2, 32], strides = [1, 1]} : vector<2x96xf32> to vector<2x32xf32>
    %194 = vector.extract_strided_slice %192 {offsets = [0, 0], sizes = [2, 32], strides = [1, 1]} : vector<2x96xf32> to vector<2x32xf32>
    %195 = arith.addf %193, %194 : vector<2x32xf32>
    %196 = arith.negf %195 : vector<2x32xf32>
    %197 = math.exp %196 : vector<2x32xf32>
    %cst_35 = arith.constant 1.000000e+00 : f32
    %198 = vector.broadcast %cst_35 : f32 to vector<2x32xf32>
    %199 = arith.addf %198, %197 : vector<2x32xf32>
    %200 = arith.divf %198, %199 : vector<2x32xf32>
    %201 = vector.extract_strided_slice %189 {offsets = [0, 32], sizes = [2, 32], strides = [1, 1]} : vector<2x96xf32> to vector<2x32xf32>
    %202 = vector.extract_strided_slice %192 {offsets = [0, 32], sizes = [2, 32], strides = [1, 1]} : vector<2x96xf32> to vector<2x32xf32>
    %203 = arith.addf %201, %202 : vector<2x32xf32>
    %204 = arith.negf %203 : vector<2x32xf32>
    %205 = math.exp %204 : vector<2x32xf32>
    %cst_36 = arith.constant 1.000000e+00 : f32
    %206 = vector.broadcast %cst_36 : f32 to vector<2x32xf32>
    %207 = arith.addf %206, %205 : vector<2x32xf32>
    %208 = arith.divf %206, %207 : vector<2x32xf32>
    %209 = vector.extract_strided_slice %189 {offsets = [0, 64], sizes = [2, 32], strides = [1, 1]} : vector<2x96xf32> to vector<2x32xf32>
    %210 = vector.extract_strided_slice %192 {offsets = [0, 64], sizes = [2, 32], strides = [1, 1]} : vector<2x96xf32> to vector<2x32xf32>
    %211 = arith.mulf %200, %210 : vector<2x32xf32>
    %212 = arith.addf %209, %211 : vector<2x32xf32>
    %213 = math.tanh %212 : vector<2x32xf32>
    %cst_37 = arith.constant 1.000000e+00 : f32
    %214 = vector.broadcast %cst_37 : f32 to vector<2x32xf32>
    %215 = arith.subf %214, %208 : vector<2x32xf32>
    %216 = arith.mulf %215, %213 : vector<2x32xf32>
    %217 = arith.mulf %208, %188 : vector<2x32xf32>
    %218 = arith.addf %216, %217 : vector<2x32xf32>
    %219 = vector.extract_strided_slice %5 {offsets = [14, 0], sizes = [2, 96], strides = [1, 1]} : vector<16x96xf32> to vector<2x96xf32>
    %cst_38 = arith.constant dense<0.000000e+00> : vector<2x96xf32>
    %220 = tpu.matmul %218, %6, %cst_38 {dimension_numbers = #tpu.dot_dimension_numbers<[1], [0], [0], [1], [0, 0, 1, 1], [], []>} : vector<2x32xf32>, vector<32x96xf32>, vector<2x96xf32> -> vector<2x96xf32>
    %221 = vector.broadcast %7 : vector<1x96xf32> to vector<2x96xf32>
    %222 = arith.addf %220, %221 : vector<2x96xf32>
    %223 = vector.extract_strided_slice %219 {offsets = [0, 0], sizes = [2, 32], strides = [1, 1]} : vector<2x96xf32> to vector<2x32xf32>
    %224 = vector.extract_strided_slice %222 {offsets = [0, 0], sizes = [2, 32], strides = [1, 1]} : vector<2x96xf32> to vector<2x32xf32>
    %225 = arith.addf %223, %224 : vector<2x32xf32>
    %226 = arith.negf %225 : vector<2x32xf32>
    %227 = math.exp %226 : vector<2x32xf32>
    %cst_39 = arith.constant 1.000000e+00 : f32
    %228 = vector.broadcast %cst_39 : f32 to vector<2x32xf32>
    %229 = arith.addf %228, %227 : vector<2x32xf32>
    %230 = arith.divf %228, %229 : vector<2x32xf32>
    %231 = vector.extract_strided_slice %219 {offsets = [0, 32], sizes = [2, 32], strides = [1, 1]} : vector<2x96xf32> to vector<2x32xf32>
    %232 = vector.extract_strided_slice %222 {offsets = [0, 32], sizes = [2, 32], strides = [1, 1]} : vector<2x96xf32> to vector<2x32xf32>
    %233 = arith.addf %231, %232 : vector<2x32xf32>
    %234 = arith.negf %233 : vector<2x32xf32>
    %235 = math.exp %234 : vector<2x32xf32>
    %cst_40 = arith.constant 1.000000e+00 : f32
    %236 = vector.broadcast %cst_40 : f32 to vector<2x32xf32>
    %237 = arith.addf %236, %235 : vector<2x32xf32>
    %238 = arith.divf %236, %237 : vector<2x32xf32>
    %239 = vector.extract_strided_slice %219 {offsets = [0, 64], sizes = [2, 32], strides = [1, 1]} : vector<2x96xf32> to vector<2x32xf32>
    %240 = vector.extract_strided_slice %222 {offsets = [0, 64], sizes = [2, 32], strides = [1, 1]} : vector<2x96xf32> to vector<2x32xf32>
    %241 = arith.mulf %230, %240 : vector<2x32xf32>
    %242 = arith.addf %239, %241 : vector<2x32xf32>
    %243 = math.tanh %242 : vector<2x32xf32>
    %cst_41 = arith.constant 1.000000e+00 : f32
    %244 = vector.broadcast %cst_41 : f32 to vector<2x32xf32>
    %245 = arith.subf %244, %238 : vector<2x32xf32>
    %246 = arith.mulf %245, %243 : vector<2x32xf32>
    %247 = arith.mulf %238, %218 : vector<2x32xf32>
    %248 = arith.addf %246, %247 : vector<2x32xf32>
    %c0_42 = arith.constant 0 : index
    %c0_43 = arith.constant 0 : index
    %249 = vector.load %arg6[%c0_42, %c0_43] : memref<32x3xf32, #tpu.memory_space<vmem>>, vector<32x3xf32>
    %cst_44 = arith.constant dense<0.000000e+00> : vector<2x3xf32>
    %250 = tpu.matmul %248, %249, %cst_44 {dimension_numbers = #tpu.dot_dimension_numbers<[1], [0], [0], [1], [0, 0, 1, 1], [], []>} : vector<2x32xf32>, vector<32x3xf32>, vector<2x3xf32> -> vector<2x3xf32>
    %c0_45 = arith.constant 0 : index
    %c0_46 = arith.constant 0 : index
    %251 = vector.load %arg7[%c0_45, %c0_46] : memref<1x3xf32, #tpu.memory_space<vmem>>, vector<1x3xf32>
    %252 = vector.broadcast %251 : vector<1x3xf32> to vector<2x3xf32>
    %253 = arith.addf %250, %252 : vector<2x3xf32>
    %cst_47 = arith.constant dense<0xFF800000> : vector<2xf32>
    %254 = vector.multi_reduction <maximumf>, %253, %cst_47 [1] : vector<2x3xf32> to vector<2xf32>
    %255 = vector.shape_cast %254 : vector<2xf32> to vector<2x1xf32>
    %256 = vector.broadcast %255 : vector<2x1xf32> to vector<2x3xf32>
    %257 = arith.subf %253, %256 : vector<2x3xf32>
    %258 = math.exp %257 : vector<2x3xf32>
    %cst_48 = arith.constant dense<0.000000e+00> : vector<2xf32>
    %259 = vector.multi_reduction <add>, %258, %cst_48 [1] : vector<2x3xf32> to vector<2xf32>
    %260 = vector.shape_cast %259 : vector<2xf32> to vector<2x1xf32>
    %261 = vector.broadcast %260 : vector<2x1xf32> to vector<2x3xf32>
    %262 = arith.divf %258, %261 : vector<2x3xf32>
    %c0_49 = arith.constant 0 : index
    %c0_50 = arith.constant 0 : index
    %263 = vector.load %arg8[%c0_49, %c0_50] : memref<2x3xf32, #tpu.memory_space<vmem>>, vector<2x3xf32>
    tpu.vector_store %arg8[%c0_49, %c0_50], %262 {strides = array<i32>} : memref<2x3xf32, #tpu.memory_space<vmem>>, vector<2x3xf32>,
    return
  }
  func.func @transform_0(%arg0: i32) -> (i32, i32) {
    %c0_i32 = arith.constant 0 : i32
    %c0_i32_0 = arith.constant 0 : i32
    %c0_i32_1 = arith.constant 0 : i32
    return %c0_i32, %c0_i32_0 : i32, i32
  }
  func.func @transform_1(%arg0: i32) -> (i32, i32) {
    %c0_i32 = arith.constant 0 : i32
    %c0_i32_0 = arith.constant 0 : i32
    %c0_i32_1 = arith.constant 0 : i32
    return %c0_i32, %c0_i32_0 : i32, i32
  }
  func.func @transform_2(%arg0: i32) -> (i32, i32) {
    %c0_i32 = arith.constant 0 : i32
    %c0_i32_0 = arith.constant 0 : i32
    %c0_i32_1 = arith.constant 0 : i32
    return %c0_i32, %c0_i32_0 : i32, i32
  }
  func.func @transform_3(%arg0: i32) -> (i32, i32) {
    %c0_i32 = arith.constant 0 : i32
    %c0_i32_0 = arith.constant 0 : i32
    %c0_i32_1 = arith.constant 0 : i32
    return %c0_i32, %c0_i32_0 : i32, i32
  }
  func.func @transform_4(%arg0: i32) -> (i32, i32) {
    %c0_i32 = arith.constant 0 : i32
    %c0_i32_0 = arith.constant 0 : i32
    %c0_i32_1 = arith.constant 0 : i32
    return %c0_i32, %c0_i32_0 : i32, i32
  }
  func.func @transform_5(%arg0: i32) -> (i32, i32) {
    %c0_i32 = arith.constant 0 : i32
    %c0_i32_0 = arith.constant 0 : i32
    %c0_i32_1 = arith.constant 0 : i32
    return %c0_i32, %c0_i32_0 : i32, i32
  }
  func.func @transform_6(%arg0: i32) -> (i32, i32) {
    %c0_i32 = arith.constant 0 : i32
    %c0_i32_0 = arith.constant 0 : i32
    %c0_i32_1 = arith.constant 0 : i32
    return %c0_i32, %c0_i32_0 : i32, i32
  }
  func.func @transform_7(%arg0: i32) -> (i32, i32) {
    %c0_i32 = arith.constant 0 : i32
    %c0_i32_0 = arith.constant 0 : i32
    %c0_i32_1 = arith.constant 0 : i32
    return %c0_i32, %c0_i32_0 : i32, i32
  }
}

module attributes {stable_mosaic.version = 11 : i64} {
  func.func @gru_layer_kernel(%arg0: i32, %arg1: memref<16x16xf32, #tpu.memory_space<vmem>>, %arg2: memref<16x96xf32, #tpu.memory_space<vmem>>, %arg3: memref<1x96xf32, #tpu.memory_space<vmem>>, %arg4: memref<32x96xf32, #tpu.memory_space<vmem>>, %arg5: memref<1x96xf32, #tpu.memory_space<vmem>>, %arg6: memref<8x2x32xf32, #tpu.memory_space<vmem>>) attributes {dimension_semantics = [#tpu.dimension_semantics<arbitrary>], iteration_bounds = array<i64: 1>, scalar_prefetch = 0 : i64, scratch_operands = 0 : i64, tpu.core_type = #tpu.core_type<tc>, window_params = [{pipeline_mode = #tpu.pipeline_mode<synchronous>, transform_indices = @transform_0, window_bounds = array<i64: 16, 16>}, {pipeline_mode = #tpu.pipeline_mode<synchronous>, transform_indices = @transform_1, window_bounds = array<i64: 16, 96>}, {pipeline_mode = #tpu.pipeline_mode<synchronous>, transform_indices = @transform_2, window_bounds = array<i64: 1, 96>}, {pipeline_mode = #tpu.pipeline_mode<synchronous>, transform_indices = @transform_3, window_bounds = array<i64: 32, 96>}, {pipeline_mode = #tpu.pipeline_mode<synchronous>, transform_indices = @transform_4, window_bounds = array<i64: 1, 96>}, {pipeline_mode = #tpu.pipeline_mode<synchronous>, transform_indices = @transform_5, window_bounds = array<i64: 8, 2, 32>}]} {
    %c0 = arith.constant 0 : index
    %c0_0 = arith.constant 0 : index
    %0 = vector.load %arg1[%c0, %c0_0] : memref<16x16xf32, #tpu.memory_space<vmem>>, vector<16x16xf32>
    %c0_1 = arith.constant 0 : index
    %c0_2 = arith.constant 0 : index
    %1 = vector.load %arg2[%c0_1, %c0_2] : memref<16x96xf32, #tpu.memory_space<vmem>>, vector<16x96xf32>
    %cst = arith.constant dense<0.000000e+00> : vector<16x96xf32>
    %2 = tpu.matmul %0, %1, %cst {dimension_numbers = #tpu.dot_dimension_numbers<[1], [0], [0], [1], [0, 0, 1, 1], [], []>} : vector<16x16xf32>, vector<16x96xf32>, vector<16x96xf32> -> vector<16x96xf32>
    %c0_3 = arith.constant 0 : index
    %c0_4 = arith.constant 0 : index
    %3 = vector.load %arg3[%c0_3, %c0_4] : memref<1x96xf32, #tpu.memory_space<vmem>>, vector<1x96xf32>
    %4 = vector.broadcast %3 : vector<1x96xf32> to vector<16x96xf32>
    %5 = arith.addf %2, %4 : vector<16x96xf32>
    %c0_5 = arith.constant 0 : index
    %c0_6 = arith.constant 0 : index
    %6 = vector.load %arg4[%c0_5, %c0_6] : memref<32x96xf32, #tpu.memory_space<vmem>>, vector<32x96xf32>
    %c0_7 = arith.constant 0 : index
    %c0_8 = arith.constant 0 : index
    %7 = vector.load %arg5[%c0_7, %c0_8] : memref<1x96xf32, #tpu.memory_space<vmem>>, vector<1x96xf32>
    %cst_9 = arith.constant 0.000000e+00 : f32
    %8 = vector.broadcast %cst_9 : f32 to vector<2x32xf32>
    %9 = vector.extract_strided_slice %5 {offsets = [0, 0], sizes = [2, 96], strides = [1, 1]} : vector<16x96xf32> to vector<2x96xf32>
    %cst_10 = arith.constant dense<0.000000e+00> : vector<2x96xf32>
    %10 = tpu.matmul %8, %6, %cst_10 {dimension_numbers = #tpu.dot_dimension_numbers<[1], [0], [0], [1], [0, 0, 1, 1], [], []>} : vector<2x32xf32>, vector<32x96xf32>, vector<2x96xf32> -> vector<2x96xf32>
    %11 = vector.broadcast %7 : vector<1x96xf32> to vector<2x96xf32>
    %12 = arith.addf %10, %11 : vector<2x96xf32>
    %13 = vector.extract_strided_slice %9 {offsets = [0, 0], sizes = [2, 32], strides = [1, 1]} : vector<2x96xf32> to vector<2x32xf32>
    %14 = vector.extract_strided_slice %12 {offsets = [0, 0], sizes = [2, 32], strides = [1, 1]} : vector<2x96xf32> to vector<2x32xf32>
    %15 = arith.addf %13, %14 : vector<2x32xf32>
    %16 = arith.negf %15 : vector<2x32xf32>
    %17 = math.exp %16 : vector<2x32xf32>
    %cst_11 = arith.constant 1.000000e+00 : f32
    %18 = vector.broadcast %cst_11 : f32 to vector<2x32xf32>
    %19 = arith.addf %18, %17 : vector<2x32xf32>
    %20 = arith.divf %18, %19 : vector<2x32xf32>
    %21 = vector.extract_strided_slice %9 {offsets = [0, 32], sizes = [2, 32], strides = [1, 1]} : vector<2x96xf32> to vector<2x32xf32>
    %22 = vector.extract_strided_slice %12 {offsets = [0, 32], sizes = [2, 32], strides = [1, 1]} : vector<2x96xf32> to vector<2x32xf32>
    %23 = arith.addf %21, %22 : vector<2x32xf32>
    %24 = arith.negf %23 : vector<2x32xf32>
    %25 = math.exp %24 : vector<2x32xf32>
    %cst_12 = arith.constant 1.000000e+00 : f32
    %26 = vector.broadcast %cst_12 : f32 to vector<2x32xf32>
    %27 = arith.addf %26, %25 : vector<2x32xf32>
    %28 = arith.divf %26, %27 : vector<2x32xf32>
    %29 = vector.extract_strided_slice %9 {offsets = [0, 64], sizes = [2, 32], strides = [1, 1]} : vector<2x96xf32> to vector<2x32xf32>
    %30 = vector.extract_strided_slice %12 {offsets = [0, 64], sizes = [2, 32], strides = [1, 1]} : vector<2x96xf32> to vector<2x32xf32>
    %31 = arith.mulf %20, %30 : vector<2x32xf32>
    %32 = arith.addf %29, %31 : vector<2x32xf32>
    %33 = math.tanh %32 : vector<2x32xf32>
    %cst_13 = arith.constant 1.000000e+00 : f32
    %34 = vector.broadcast %cst_13 : f32 to vector<2x32xf32>
    %35 = arith.subf %34, %28 : vector<2x32xf32>
    %36 = arith.mulf %35, %33 : vector<2x32xf32>
    %37 = arith.mulf %28, %8 : vector<2x32xf32>
    %38 = arith.addf %36, %37 : vector<2x32xf32>
    %c0_14 = arith.constant 0 : index
    %c0_15 = arith.constant 0 : index
    %c0_16 = arith.constant 0 : index
    %39 = vector.load %arg6[%c0_14, %c0_15, %c0_16] : memref<8x2x32xf32, #tpu.memory_space<vmem>>, vector<1x2x32xf32>
    %40 = vector.shape_cast %39 : vector<1x2x32xf32> to vector<2x32xf32>
    %41 = vector.shape_cast %38 : vector<2x32xf32> to vector<1x2x32xf32>
    tpu.vector_store %arg6[%c0_14, %c0_15, %c0_16], %41 {strides = array<i32>} : memref<8x2x32xf32, #tpu.memory_space<vmem>>, vector<1x2x32xf32>,
    %42 = vector.extract_strided_slice %5 {offsets = [2, 0], sizes = [2, 96], strides = [1, 1]} : vector<16x96xf32> to vector<2x96xf32>
    %cst_17 = arith.constant dense<0.000000e+00> : vector<2x96xf32>
    %43 = tpu.matmul %38, %6, %cst_17 {dimension_numbers = #tpu.dot_dimension_numbers<[1], [0], [0], [1], [0, 0, 1, 1], [], []>} : vector<2x32xf32>, vector<32x96xf32>, vector<2x96xf32> -> vector<2x96xf32>
    %44 = vector.broadcast %7 : vector<1x96xf32> to vector<2x96xf32>
    %45 = arith.addf %43, %44 : vector<2x96xf32>
    %46 = vector.extract_strided_slice %42 {offsets = [0, 0], sizes = [2, 32], strides = [1, 1]} : vector<2x96xf32> to vector<2x32xf32>
    %47 = vector.extract_strided_slice %45 {offsets = [0, 0], sizes = [2, 32], strides = [1, 1]} : vector<2x96xf32> to vector<2x32xf32>
    %48 = arith.addf %46, %47 : vector<2x32xf32>
    %49 = arith.negf %48 : vector<2x32xf32>
    %50 = math.exp %49 : vector<2x32xf32>
    %cst_18 = arith.constant 1.000000e+00 : f32
    %51 = vector.broadcast %cst_18 : f32 to vector<2x32xf32>
    %52 = arith.addf %51, %50 : vector<2x32xf32>
    %53 = arith.divf %51, %52 : vector<2x32xf32>
    %54 = vector.extract_strided_slice %42 {offsets = [0, 32], sizes = [2, 32], strides = [1, 1]} : vector<2x96xf32> to vector<2x32xf32>
    %55 = vector.extract_strided_slice %45 {offsets = [0, 32], sizes = [2, 32], strides = [1, 1]} : vector<2x96xf32> to vector<2x32xf32>
    %56 = arith.addf %54, %55 : vector<2x32xf32>
    %57 = arith.negf %56 : vector<2x32xf32>
    %58 = math.exp %57 : vector<2x32xf32>
    %cst_19 = arith.constant 1.000000e+00 : f32
    %59 = vector.broadcast %cst_19 : f32 to vector<2x32xf32>
    %60 = arith.addf %59, %58 : vector<2x32xf32>
    %61 = arith.divf %59, %60 : vector<2x32xf32>
    %62 = vector.extract_strided_slice %42 {offsets = [0, 64], sizes = [2, 32], strides = [1, 1]} : vector<2x96xf32> to vector<2x32xf32>
    %63 = vector.extract_strided_slice %45 {offsets = [0, 64], sizes = [2, 32], strides = [1, 1]} : vector<2x96xf32> to vector<2x32xf32>
    %64 = arith.mulf %53, %63 : vector<2x32xf32>
    %65 = arith.addf %62, %64 : vector<2x32xf32>
    %66 = math.tanh %65 : vector<2x32xf32>
    %cst_20 = arith.constant 1.000000e+00 : f32
    %67 = vector.broadcast %cst_20 : f32 to vector<2x32xf32>
    %68 = arith.subf %67, %61 : vector<2x32xf32>
    %69 = arith.mulf %68, %66 : vector<2x32xf32>
    %70 = arith.mulf %61, %38 : vector<2x32xf32>
    %71 = arith.addf %69, %70 : vector<2x32xf32>
    %c1 = arith.constant 1 : index
    %c0_21 = arith.constant 0 : index
    %c0_22 = arith.constant 0 : index
    %72 = vector.load %arg6[%c1, %c0_21, %c0_22] : memref<8x2x32xf32, #tpu.memory_space<vmem>>, vector<1x2x32xf32>
    %73 = vector.shape_cast %72 : vector<1x2x32xf32> to vector<2x32xf32>
    %74 = vector.shape_cast %71 : vector<2x32xf32> to vector<1x2x32xf32>
    tpu.vector_store %arg6[%c1, %c0_21, %c0_22], %74 {strides = array<i32>} : memref<8x2x32xf32, #tpu.memory_space<vmem>>, vector<1x2x32xf32>,
    %75 = vector.extract_strided_slice %5 {offsets = [4, 0], sizes = [2, 96], strides = [1, 1]} : vector<16x96xf32> to vector<2x96xf32>
    %cst_23 = arith.constant dense<0.000000e+00> : vector<2x96xf32>
    %76 = tpu.matmul %71, %6, %cst_23 {dimension_numbers = #tpu.dot_dimension_numbers<[1], [0], [0], [1], [0, 0, 1, 1], [], []>} : vector<2x32xf32>, vector<32x96xf32>, vector<2x96xf32> -> vector<2x96xf32>
    %77 = vector.broadcast %7 : vector<1x96xf32> to vector<2x96xf32>
    %78 = arith.addf %76, %77 : vector<2x96xf32>
    %79 = vector.extract_strided_slice %75 {offsets = [0, 0], sizes = [2, 32], strides = [1, 1]} : vector<2x96xf32> to vector<2x32xf32>
    %80 = vector.extract_strided_slice %78 {offsets = [0, 0], sizes = [2, 32], strides = [1, 1]} : vector<2x96xf32> to vector<2x32xf32>
    %81 = arith.addf %79, %80 : vector<2x32xf32>
    %82 = arith.negf %81 : vector<2x32xf32>
    %83 = math.exp %82 : vector<2x32xf32>
    %cst_24 = arith.constant 1.000000e+00 : f32
    %84 = vector.broadcast %cst_24 : f32 to vector<2x32xf32>
    %85 = arith.addf %84, %83 : vector<2x32xf32>
    %86 = arith.divf %84, %85 : vector<2x32xf32>
    %87 = vector.extract_strided_slice %75 {offsets = [0, 32], sizes = [2, 32], strides = [1, 1]} : vector<2x96xf32> to vector<2x32xf32>
    %88 = vector.extract_strided_slice %78 {offsets = [0, 32], sizes = [2, 32], strides = [1, 1]} : vector<2x96xf32> to vector<2x32xf32>
    %89 = arith.addf %87, %88 : vector<2x32xf32>
    %90 = arith.negf %89 : vector<2x32xf32>
    %91 = math.exp %90 : vector<2x32xf32>
    %cst_25 = arith.constant 1.000000e+00 : f32
    %92 = vector.broadcast %cst_25 : f32 to vector<2x32xf32>
    %93 = arith.addf %92, %91 : vector<2x32xf32>
    %94 = arith.divf %92, %93 : vector<2x32xf32>
    %95 = vector.extract_strided_slice %75 {offsets = [0, 64], sizes = [2, 32], strides = [1, 1]} : vector<2x96xf32> to vector<2x32xf32>
    %96 = vector.extract_strided_slice %78 {offsets = [0, 64], sizes = [2, 32], strides = [1, 1]} : vector<2x96xf32> to vector<2x32xf32>
    %97 = arith.mulf %86, %96 : vector<2x32xf32>
    %98 = arith.addf %95, %97 : vector<2x32xf32>
    %99 = math.tanh %98 : vector<2x32xf32>
    %cst_26 = arith.constant 1.000000e+00 : f32
    %100 = vector.broadcast %cst_26 : f32 to vector<2x32xf32>
    %101 = arith.subf %100, %94 : vector<2x32xf32>
    %102 = arith.mulf %101, %99 : vector<2x32xf32>
    %103 = arith.mulf %94, %71 : vector<2x32xf32>
    %104 = arith.addf %102, %103 : vector<2x32xf32>
    %c2 = arith.constant 2 : index
    %c0_27 = arith.constant 0 : index
    %c0_28 = arith.constant 0 : index
    %105 = vector.load %arg6[%c2, %c0_27, %c0_28] : memref<8x2x32xf32, #tpu.memory_space<vmem>>, vector<1x2x32xf32>
    %106 = vector.shape_cast %105 : vector<1x2x32xf32> to vector<2x32xf32>
    %107 = vector.shape_cast %104 : vector<2x32xf32> to vector<1x2x32xf32>
    tpu.vector_store %arg6[%c2, %c0_27, %c0_28], %107 {strides = array<i32>} : memref<8x2x32xf32, #tpu.memory_space<vmem>>, vector<1x2x32xf32>,
    %108 = vector.extract_strided_slice %5 {offsets = [6, 0], sizes = [2, 96], strides = [1, 1]} : vector<16x96xf32> to vector<2x96xf32>
    %cst_29 = arith.constant dense<0.000000e+00> : vector<2x96xf32>
    %109 = tpu.matmul %104, %6, %cst_29 {dimension_numbers = #tpu.dot_dimension_numbers<[1], [0], [0], [1], [0, 0, 1, 1], [], []>} : vector<2x32xf32>, vector<32x96xf32>, vector<2x96xf32> -> vector<2x96xf32>
    %110 = vector.broadcast %7 : vector<1x96xf32> to vector<2x96xf32>
    %111 = arith.addf %109, %110 : vector<2x96xf32>
    %112 = vector.extract_strided_slice %108 {offsets = [0, 0], sizes = [2, 32], strides = [1, 1]} : vector<2x96xf32> to vector<2x32xf32>
    %113 = vector.extract_strided_slice %111 {offsets = [0, 0], sizes = [2, 32], strides = [1, 1]} : vector<2x96xf32> to vector<2x32xf32>
    %114 = arith.addf %112, %113 : vector<2x32xf32>
    %115 = arith.negf %114 : vector<2x32xf32>
    %116 = math.exp %115 : vector<2x32xf32>
    %cst_30 = arith.constant 1.000000e+00 : f32
    %117 = vector.broadcast %cst_30 : f32 to vector<2x32xf32>
    %118 = arith.addf %117, %116 : vector<2x32xf32>
    %119 = arith.divf %117, %118 : vector<2x32xf32>
    %120 = vector.extract_strided_slice %108 {offsets = [0, 32], sizes = [2, 32], strides = [1, 1]} : vector<2x96xf32> to vector<2x32xf32>
    %121 = vector.extract_strided_slice %111 {offsets = [0, 32], sizes = [2, 32], strides = [1, 1]} : vector<2x96xf32> to vector<2x32xf32>
    %122 = arith.addf %120, %121 : vector<2x32xf32>
    %123 = arith.negf %122 : vector<2x32xf32>
    %124 = math.exp %123 : vector<2x32xf32>
    %cst_31 = arith.constant 1.000000e+00 : f32
    %125 = vector.broadcast %cst_31 : f32 to vector<2x32xf32>
    %126 = arith.addf %125, %124 : vector<2x32xf32>
    %127 = arith.divf %125, %126 : vector<2x32xf32>
    %128 = vector.extract_strided_slice %108 {offsets = [0, 64], sizes = [2, 32], strides = [1, 1]} : vector<2x96xf32> to vector<2x32xf32>
    %129 = vector.extract_strided_slice %111 {offsets = [0, 64], sizes = [2, 32], strides = [1, 1]} : vector<2x96xf32> to vector<2x32xf32>
    %130 = arith.mulf %119, %129 : vector<2x32xf32>
    %131 = arith.addf %128, %130 : vector<2x32xf32>
    %132 = math.tanh %131 : vector<2x32xf32>
    %cst_32 = arith.constant 1.000000e+00 : f32
    %133 = vector.broadcast %cst_32 : f32 to vector<2x32xf32>
    %134 = arith.subf %133, %127 : vector<2x32xf32>
    %135 = arith.mulf %134, %132 : vector<2x32xf32>
    %136 = arith.mulf %127, %104 : vector<2x32xf32>
    %137 = arith.addf %135, %136 : vector<2x32xf32>
    %c3 = arith.constant 3 : index
    %c0_33 = arith.constant 0 : index
    %c0_34 = arith.constant 0 : index
    %138 = vector.load %arg6[%c3, %c0_33, %c0_34] : memref<8x2x32xf32, #tpu.memory_space<vmem>>, vector<1x2x32xf32>
    %139 = vector.shape_cast %138 : vector<1x2x32xf32> to vector<2x32xf32>
    %140 = vector.shape_cast %137 : vector<2x32xf32> to vector<1x2x32xf32>
    tpu.vector_store %arg6[%c3, %c0_33, %c0_34], %140 {strides = array<i32>} : memref<8x2x32xf32, #tpu.memory_space<vmem>>, vector<1x2x32xf32>,
    %141 = vector.extract_strided_slice %5 {offsets = [8, 0], sizes = [2, 96], strides = [1, 1]} : vector<16x96xf32> to vector<2x96xf32>
    %cst_35 = arith.constant dense<0.000000e+00> : vector<2x96xf32>
    %142 = tpu.matmul %137, %6, %cst_35 {dimension_numbers = #tpu.dot_dimension_numbers<[1], [0], [0], [1], [0, 0, 1, 1], [], []>} : vector<2x32xf32>, vector<32x96xf32>, vector<2x96xf32> -> vector<2x96xf32>
    %143 = vector.broadcast %7 : vector<1x96xf32> to vector<2x96xf32>
    %144 = arith.addf %142, %143 : vector<2x96xf32>
    %145 = vector.extract_strided_slice %141 {offsets = [0, 0], sizes = [2, 32], strides = [1, 1]} : vector<2x96xf32> to vector<2x32xf32>
    %146 = vector.extract_strided_slice %144 {offsets = [0, 0], sizes = [2, 32], strides = [1, 1]} : vector<2x96xf32> to vector<2x32xf32>
    %147 = arith.addf %145, %146 : vector<2x32xf32>
    %148 = arith.negf %147 : vector<2x32xf32>
    %149 = math.exp %148 : vector<2x32xf32>
    %cst_36 = arith.constant 1.000000e+00 : f32
    %150 = vector.broadcast %cst_36 : f32 to vector<2x32xf32>
    %151 = arith.addf %150, %149 : vector<2x32xf32>
    %152 = arith.divf %150, %151 : vector<2x32xf32>
    %153 = vector.extract_strided_slice %141 {offsets = [0, 32], sizes = [2, 32], strides = [1, 1]} : vector<2x96xf32> to vector<2x32xf32>
    %154 = vector.extract_strided_slice %144 {offsets = [0, 32], sizes = [2, 32], strides = [1, 1]} : vector<2x96xf32> to vector<2x32xf32>
    %155 = arith.addf %153, %154 : vector<2x32xf32>
    %156 = arith.negf %155 : vector<2x32xf32>
    %157 = math.exp %156 : vector<2x32xf32>
    %cst_37 = arith.constant 1.000000e+00 : f32
    %158 = vector.broadcast %cst_37 : f32 to vector<2x32xf32>
    %159 = arith.addf %158, %157 : vector<2x32xf32>
    %160 = arith.divf %158, %159 : vector<2x32xf32>
    %161 = vector.extract_strided_slice %141 {offsets = [0, 64], sizes = [2, 32], strides = [1, 1]} : vector<2x96xf32> to vector<2x32xf32>
    %162 = vector.extract_strided_slice %144 {offsets = [0, 64], sizes = [2, 32], strides = [1, 1]} : vector<2x96xf32> to vector<2x32xf32>
    %163 = arith.mulf %152, %162 : vector<2x32xf32>
    %164 = arith.addf %161, %163 : vector<2x32xf32>
    %165 = math.tanh %164 : vector<2x32xf32>
    %cst_38 = arith.constant 1.000000e+00 : f32
    %166 = vector.broadcast %cst_38 : f32 to vector<2x32xf32>
    %167 = arith.subf %166, %160 : vector<2x32xf32>
    %168 = arith.mulf %167, %165 : vector<2x32xf32>
    %169 = arith.mulf %160, %137 : vector<2x32xf32>
    %170 = arith.addf %168, %169 : vector<2x32xf32>
    %c4 = arith.constant 4 : index
    %c0_39 = arith.constant 0 : index
    %c0_40 = arith.constant 0 : index
    %171 = vector.load %arg6[%c4, %c0_39, %c0_40] : memref<8x2x32xf32, #tpu.memory_space<vmem>>, vector<1x2x32xf32>
    %172 = vector.shape_cast %171 : vector<1x2x32xf32> to vector<2x32xf32>
    %173 = vector.shape_cast %170 : vector<2x32xf32> to vector<1x2x32xf32>
    tpu.vector_store %arg6[%c4, %c0_39, %c0_40], %173 {strides = array<i32>} : memref<8x2x32xf32, #tpu.memory_space<vmem>>, vector<1x2x32xf32>,
    %174 = vector.extract_strided_slice %5 {offsets = [10, 0], sizes = [2, 96], strides = [1, 1]} : vector<16x96xf32> to vector<2x96xf32>
    %cst_41 = arith.constant dense<0.000000e+00> : vector<2x96xf32>
    %175 = tpu.matmul %170, %6, %cst_41 {dimension_numbers = #tpu.dot_dimension_numbers<[1], [0], [0], [1], [0, 0, 1, 1], [], []>} : vector<2x32xf32>, vector<32x96xf32>, vector<2x96xf32> -> vector<2x96xf32>
    %176 = vector.broadcast %7 : vector<1x96xf32> to vector<2x96xf32>
    %177 = arith.addf %175, %176 : vector<2x96xf32>
    %178 = vector.extract_strided_slice %174 {offsets = [0, 0], sizes = [2, 32], strides = [1, 1]} : vector<2x96xf32> to vector<2x32xf32>
    %179 = vector.extract_strided_slice %177 {offsets = [0, 0], sizes = [2, 32], strides = [1, 1]} : vector<2x96xf32> to vector<2x32xf32>
    %180 = arith.addf %178, %179 : vector<2x32xf32>
    %181 = arith.negf %180 : vector<2x32xf32>
    %182 = math.exp %181 : vector<2x32xf32>
    %cst_42 = arith.constant 1.000000e+00 : f32
    %183 = vector.broadcast %cst_42 : f32 to vector<2x32xf32>
    %184 = arith.addf %183, %182 : vector<2x32xf32>
    %185 = arith.divf %183, %184 : vector<2x32xf32>
    %186 = vector.extract_strided_slice %174 {offsets = [0, 32], sizes = [2, 32], strides = [1, 1]} : vector<2x96xf32> to vector<2x32xf32>
    %187 = vector.extract_strided_slice %177 {offsets = [0, 32], sizes = [2, 32], strides = [1, 1]} : vector<2x96xf32> to vector<2x32xf32>
    %188 = arith.addf %186, %187 : vector<2x32xf32>
    %189 = arith.negf %188 : vector<2x32xf32>
    %190 = math.exp %189 : vector<2x32xf32>
    %cst_43 = arith.constant 1.000000e+00 : f32
    %191 = vector.broadcast %cst_43 : f32 to vector<2x32xf32>
    %192 = arith.addf %191, %190 : vector<2x32xf32>
    %193 = arith.divf %191, %192 : vector<2x32xf32>
    %194 = vector.extract_strided_slice %174 {offsets = [0, 64], sizes = [2, 32], strides = [1, 1]} : vector<2x96xf32> to vector<2x32xf32>
    %195 = vector.extract_strided_slice %177 {offsets = [0, 64], sizes = [2, 32], strides = [1, 1]} : vector<2x96xf32> to vector<2x32xf32>
    %196 = arith.mulf %185, %195 : vector<2x32xf32>
    %197 = arith.addf %194, %196 : vector<2x32xf32>
    %198 = math.tanh %197 : vector<2x32xf32>
    %cst_44 = arith.constant 1.000000e+00 : f32
    %199 = vector.broadcast %cst_44 : f32 to vector<2x32xf32>
    %200 = arith.subf %199, %193 : vector<2x32xf32>
    %201 = arith.mulf %200, %198 : vector<2x32xf32>
    %202 = arith.mulf %193, %170 : vector<2x32xf32>
    %203 = arith.addf %201, %202 : vector<2x32xf32>
    %c5 = arith.constant 5 : index
    %c0_45 = arith.constant 0 : index
    %c0_46 = arith.constant 0 : index
    %204 = vector.load %arg6[%c5, %c0_45, %c0_46] : memref<8x2x32xf32, #tpu.memory_space<vmem>>, vector<1x2x32xf32>
    %205 = vector.shape_cast %204 : vector<1x2x32xf32> to vector<2x32xf32>
    %206 = vector.shape_cast %203 : vector<2x32xf32> to vector<1x2x32xf32>
    tpu.vector_store %arg6[%c5, %c0_45, %c0_46], %206 {strides = array<i32>} : memref<8x2x32xf32, #tpu.memory_space<vmem>>, vector<1x2x32xf32>,
    %207 = vector.extract_strided_slice %5 {offsets = [12, 0], sizes = [2, 96], strides = [1, 1]} : vector<16x96xf32> to vector<2x96xf32>
    %cst_47 = arith.constant dense<0.000000e+00> : vector<2x96xf32>
    %208 = tpu.matmul %203, %6, %cst_47 {dimension_numbers = #tpu.dot_dimension_numbers<[1], [0], [0], [1], [0, 0, 1, 1], [], []>} : vector<2x32xf32>, vector<32x96xf32>, vector<2x96xf32> -> vector<2x96xf32>
    %209 = vector.broadcast %7 : vector<1x96xf32> to vector<2x96xf32>
    %210 = arith.addf %208, %209 : vector<2x96xf32>
    %211 = vector.extract_strided_slice %207 {offsets = [0, 0], sizes = [2, 32], strides = [1, 1]} : vector<2x96xf32> to vector<2x32xf32>
    %212 = vector.extract_strided_slice %210 {offsets = [0, 0], sizes = [2, 32], strides = [1, 1]} : vector<2x96xf32> to vector<2x32xf32>
    %213 = arith.addf %211, %212 : vector<2x32xf32>
    %214 = arith.negf %213 : vector<2x32xf32>
    %215 = math.exp %214 : vector<2x32xf32>
    %cst_48 = arith.constant 1.000000e+00 : f32
    %216 = vector.broadcast %cst_48 : f32 to vector<2x32xf32>
    %217 = arith.addf %216, %215 : vector<2x32xf32>
    %218 = arith.divf %216, %217 : vector<2x32xf32>
    %219 = vector.extract_strided_slice %207 {offsets = [0, 32], sizes = [2, 32], strides = [1, 1]} : vector<2x96xf32> to vector<2x32xf32>
    %220 = vector.extract_strided_slice %210 {offsets = [0, 32], sizes = [2, 32], strides = [1, 1]} : vector<2x96xf32> to vector<2x32xf32>
    %221 = arith.addf %219, %220 : vector<2x32xf32>
    %222 = arith.negf %221 : vector<2x32xf32>
    %223 = math.exp %222 : vector<2x32xf32>
    %cst_49 = arith.constant 1.000000e+00 : f32
    %224 = vector.broadcast %cst_49 : f32 to vector<2x32xf32>
    %225 = arith.addf %224, %223 : vector<2x32xf32>
    %226 = arith.divf %224, %225 : vector<2x32xf32>
    %227 = vector.extract_strided_slice %207 {offsets = [0, 64], sizes = [2, 32], strides = [1, 1]} : vector<2x96xf32> to vector<2x32xf32>
    %228 = vector.extract_strided_slice %210 {offsets = [0, 64], sizes = [2, 32], strides = [1, 1]} : vector<2x96xf32> to vector<2x32xf32>
    %229 = arith.mulf %218, %228 : vector<2x32xf32>
    %230 = arith.addf %227, %229 : vector<2x32xf32>
    %231 = math.tanh %230 : vector<2x32xf32>
    %cst_50 = arith.constant 1.000000e+00 : f32
    %232 = vector.broadcast %cst_50 : f32 to vector<2x32xf32>
    %233 = arith.subf %232, %226 : vector<2x32xf32>
    %234 = arith.mulf %233, %231 : vector<2x32xf32>
    %235 = arith.mulf %226, %203 : vector<2x32xf32>
    %236 = arith.addf %234, %235 : vector<2x32xf32>
    %c6 = arith.constant 6 : index
    %c0_51 = arith.constant 0 : index
    %c0_52 = arith.constant 0 : index
    %237 = vector.load %arg6[%c6, %c0_51, %c0_52] : memref<8x2x32xf32, #tpu.memory_space<vmem>>, vector<1x2x32xf32>
    %238 = vector.shape_cast %237 : vector<1x2x32xf32> to vector<2x32xf32>
    %239 = vector.shape_cast %236 : vector<2x32xf32> to vector<1x2x32xf32>
    tpu.vector_store %arg6[%c6, %c0_51, %c0_52], %239 {strides = array<i32>} : memref<8x2x32xf32, #tpu.memory_space<vmem>>, vector<1x2x32xf32>,
    %240 = vector.extract_strided_slice %5 {offsets = [14, 0], sizes = [2, 96], strides = [1, 1]} : vector<16x96xf32> to vector<2x96xf32>
    %cst_53 = arith.constant dense<0.000000e+00> : vector<2x96xf32>
    %241 = tpu.matmul %236, %6, %cst_53 {dimension_numbers = #tpu.dot_dimension_numbers<[1], [0], [0], [1], [0, 0, 1, 1], [], []>} : vector<2x32xf32>, vector<32x96xf32>, vector<2x96xf32> -> vector<2x96xf32>
    %242 = vector.broadcast %7 : vector<1x96xf32> to vector<2x96xf32>
    %243 = arith.addf %241, %242 : vector<2x96xf32>
    %244 = vector.extract_strided_slice %240 {offsets = [0, 0], sizes = [2, 32], strides = [1, 1]} : vector<2x96xf32> to vector<2x32xf32>
    %245 = vector.extract_strided_slice %243 {offsets = [0, 0], sizes = [2, 32], strides = [1, 1]} : vector<2x96xf32> to vector<2x32xf32>
    %246 = arith.addf %244, %245 : vector<2x32xf32>
    %247 = arith.negf %246 : vector<2x32xf32>
    %248 = math.exp %247 : vector<2x32xf32>
    %cst_54 = arith.constant 1.000000e+00 : f32
    %249 = vector.broadcast %cst_54 : f32 to vector<2x32xf32>
    %250 = arith.addf %249, %248 : vector<2x32xf32>
    %251 = arith.divf %249, %250 : vector<2x32xf32>
    %252 = vector.extract_strided_slice %240 {offsets = [0, 32], sizes = [2, 32], strides = [1, 1]} : vector<2x96xf32> to vector<2x32xf32>
    %253 = vector.extract_strided_slice %243 {offsets = [0, 32], sizes = [2, 32], strides = [1, 1]} : vector<2x96xf32> to vector<2x32xf32>
    %254 = arith.addf %252, %253 : vector<2x32xf32>
    %255 = arith.negf %254 : vector<2x32xf32>
    %256 = math.exp %255 : vector<2x32xf32>
    %cst_55 = arith.constant 1.000000e+00 : f32
    %257 = vector.broadcast %cst_55 : f32 to vector<2x32xf32>
    %258 = arith.addf %257, %256 : vector<2x32xf32>
    %259 = arith.divf %257, %258 : vector<2x32xf32>
    %260 = vector.extract_strided_slice %240 {offsets = [0, 64], sizes = [2, 32], strides = [1, 1]} : vector<2x96xf32> to vector<2x32xf32>
    %261 = vector.extract_strided_slice %243 {offsets = [0, 64], sizes = [2, 32], strides = [1, 1]} : vector<2x96xf32> to vector<2x32xf32>
    %262 = arith.mulf %251, %261 : vector<2x32xf32>
    %263 = arith.addf %260, %262 : vector<2x32xf32>
    %264 = math.tanh %263 : vector<2x32xf32>
    %cst_56 = arith.constant 1.000000e+00 : f32
    %265 = vector.broadcast %cst_56 : f32 to vector<2x32xf32>
    %266 = arith.subf %265, %259 : vector<2x32xf32>
    %267 = arith.mulf %266, %264 : vector<2x32xf32>
    %268 = arith.mulf %259, %236 : vector<2x32xf32>
    %269 = arith.addf %267, %268 : vector<2x32xf32>
    %c7 = arith.constant 7 : index
    %c0_57 = arith.constant 0 : index
    %c0_58 = arith.constant 0 : index
    %270 = vector.load %arg6[%c7, %c0_57, %c0_58] : memref<8x2x32xf32, #tpu.memory_space<vmem>>, vector<1x2x32xf32>
    %271 = vector.shape_cast %270 : vector<1x2x32xf32> to vector<2x32xf32>
    %272 = vector.shape_cast %269 : vector<2x32xf32> to vector<1x2x32xf32>
    tpu.vector_store %arg6[%c7, %c0_57, %c0_58], %272 {strides = array<i32>} : memref<8x2x32xf32, #tpu.memory_space<vmem>>, vector<1x2x32xf32>,
    return
  }
  func.func @transform_0(%arg0: i32) -> (i32, i32) {
    %c0_i32 = arith.constant 0 : i32
    %c0_i32_0 = arith.constant 0 : i32
    %c0_i32_1 = arith.constant 0 : i32
    return %c0_i32, %c0_i32_0 : i32, i32
  }
  func.func @transform_1(%arg0: i32) -> (i32, i32) {
    %c0_i32 = arith.constant 0 : i32
    %c0_i32_0 = arith.constant 0 : i32
    %c0_i32_1 = arith.constant 0 : i32
    return %c0_i32, %c0_i32_0 : i32, i32
  }
  func.func @transform_2(%arg0: i32) -> (i32, i32) {
    %c0_i32 = arith.constant 0 : i32
    %c0_i32_0 = arith.constant 0 : i32
    %c0_i32_1 = arith.constant 0 : i32
    return %c0_i32, %c0_i32_0 : i32, i32
  }
  func.func @transform_3(%arg0: i32) -> (i32, i32) {
    %c0_i32 = arith.constant 0 : i32
    %c0_i32_0 = arith.constant 0 : i32
    %c0_i32_1 = arith.constant 0 : i32
    return %c0_i32, %c0_i32_0 : i32, i32
  }
  func.func @transform_4(%arg0: i32) -> (i32, i32) {
    %c0_i32 = arith.constant 0 : i32
    %c0_i32_0 = arith.constant 0 : i32
    %c0_i32_1 = arith.constant 0 : i32
    return %c0_i32, %c0_i32_0 : i32, i32
  }
  func.func @transform_5(%arg0: i32) -> (i32, i32, i32) {
    %c0_i32 = arith.constant 0 : i32
    %c0_i32_0 = arith.constant 0 : i32
    %c0_i32_1 = arith.constant 0 : i32
    %c0_i32_2 = arith.constant 0 : i32
    return %c0_i32, %c0_i32_0, %c0_i32_1 : i32, i32, i32
  }
}

</mosaic_0001>

<bundles_post_ra>
// kernel: gru_forward.3
= control target key start
LH: loop header
LB: loop body
LE: loop exit
PB: predicated region body
PF: predicated region fallthrough
CT: control target
= control target key end

     0   :  { %s971_s0 = inlined_call_operand.vmem [shape: f32[16,32], index: 0, kind: input, shape index: {}]   ;;  %s972_s1 = inlined_call_operand.vmem [shape: f32[32,96], index: 1, kind: input, shape index: {}]   ;;  %s973_s2 = inlined_call_operand.vmem [shape: f32[1,96], index: 2, kind: input, shape index: {}]   ;;  %s974_s3 = inlined_call_operand.vmem [shape: f32[32,96], index: 3, kind: input, shape index: {}]   ;;  %s975_s4 = inlined_call_operand.vmem [shape: f32[1,96], index: 4, kind: input, shape index: {}]   ;;  %s976_s5 = inlined_call_operand.vmem [shape: f32[32,3], index: 5, kind: input, shape index: {}]   ;;  %s977_s6 = inlined_call_operand.vmem [shape: f32[1,3], index: 6, kind: input, shape index: {}]   ;;  %s978_s7 = inlined_call_operand.hbm [shape: f32[2,3], index: 7, kind: output, shape index: {}]  }
   0x1   :  { %v32_v0 = vld [vmem:[%s972_s1 + $0x18] sm:$0xff]  ;;  %v31_v2 = vld [vmem:[%s972_s1 + $0x10] sm:$0xff]  ;;  %v30_v4 = vld [vmem:[%s972_s1 + $0x8] sm:$0xff] }
   0x2   :  { %v70_v1 = vld [vmem:[%s974_s3 + $0x18] sm:$0xff]  ;;  %56 = vmatpush.msra.mxu0 %v32_v0  ;;  %v69_v3 = vld [vmem:[%s974_s3 + $0x10] sm:$0xff]  ;;  %v68_v5 = vld [vmem:[%s974_s3 + $0x8] sm:$0xff] }
   0x3   :  { %90 = vmatpush.msra.mxu1 %v70_v1  ;;  %154 = vmatpush.msra.mxu2 %v70_v1  ;;  %v29_v6 = vld [vmem:[%s972_s1] sm:$0xff] }
   0x4   :  { %223 = vmatpush.msra.mxu3 %v70_v1  ;;  %57 = vmatpush.msra.mxu0 %v31_v2  ;;  %v67_v7 = vld [vmem:[%s974_s3] sm:$0xff] }
   0x5   :  { %91 = vmatpush.msra.mxu1 %v69_v3  ;;  %155 = vmatpush.msra.mxu2 %v69_v3 }
   0x6   :  { %224 = vmatpush.msra.mxu3 %v69_v3 }
   0x7   :  { %12 = vsyncpa [#allocation3], 0  ;;  %58 = vmatpush.msra.mxu0 %v30_v4  ;;  %92 = vmatpush.msra.mxu1 %v68_v5  ;;  %v27_v8 = vld [vmem:[%s971_s0] sm:$0xff]  ;;  %vm37_vm0 = vcmask 261120   ;;  %v794_v9 = vmov 0.0   ;;  %s795_s19 = smov 64  }
   0x8   :  { %156 = vmatpush.msra.mxu2 %v68_v5  ;;  %225 = vmatpush.msra.mxu3 %v68_v5  ;;  %v869_v10 = vld [vmem:[%s975_s4] ss:$0 sm:$0xff]  ;;  %s682_s11 = sshll.u32 %s978_s7, 4  ;;  %s683_s11 = int_to_ptr.hbm [resolvable:$true] %s682_s11 }
   0x9   :  { %59 = vmatpush.msra.mxu0 %v29_v6  ;;  %93 = vmatpush.msra.mxu1 %v67_v7  ;;  %v876_v13 = vld [vmem:[%s973_s2] ss:$0 sm:$0xff]  ;;  %s796_s2 = smov 96  }
   0xa   :  { %691 = vmatmul.msk.f32.vlgmr.msra.gmra.mxu0 %vm37_vm0, %v27_v8  ;;  %94 = vmatmul.f32.vlgmr.msra.gmra.mxu1 %v794_v9 }
   0xb   :  { %157 = vmatpush.msra.mxu2 %v67_v7  ;;  %226 = vmatpush.msra.mxu3 %v67_v7 }
   0xc   :  { %292 = vmatpush.msrb.mxu1 %v70_v1  ;;  %495 = vmatpush.msrb.mxu0 %v70_v1 }
   0xd   :  { %361 = vmatpush.msrb.mxu2 %v70_v1  ;;  %426 = vmatpush.msrb.mxu3 %v70_v1 }
   0xe   :  { %293 = vmatpush.msrb.mxu1 %v69_v3  ;;  %496 = vmatpush.msrb.mxu0 %v69_v3 }
   0xf   :  { %362 = vmatpush.msrb.mxu2 %v69_v3  ;;  %427 = vmatpush.msrb.mxu3 %v69_v3 }
  0x10   :  { %294 = vmatpush.msrb.mxu1 %v68_v5  ;;  %497 = vmatpush.msrb.mxu0 %v68_v5 }
  0x11   :  { %363 = vmatpush.msrb.mxu2 %v68_v5  ;;  %428 = vmatpush.msrb.mxu3 %v68_v5 }
  0x12   :  { %295 = vmatpush.msrb.mxu1 %v67_v7  ;;  %498 = vmatpush.msrb.mxu0 %v67_v7 }
  0x13   :  { %364 = vmatpush.msrb.mxu2 %v67_v7  ;;  %429 = vmatpush.msrb.mxu3 %v67_v7 }
  0x14   :  { %564 = vmatpush.msra.mxu1 %v70_v1 }
  0x16   :  { %565 = vmatpush.msra.mxu1 %v69_v3 }
  0x18   :  { %566 = vmatpush.msra.mxu1 %v68_v5 }
  0x1a   :  { %567 = vmatpush.msra.mxu1 %v67_v7 }
  0x87   :  { %v95_v11 = vpop.f32.mrf.mxu1  ;;  %v61_v14 = vpop.f32.mrf.mxu0 }
  0x88   :  { %v96_v12 = vadd.f32 %v869_v10, %v95_v11  ;;  %v879_v15 = vadd.f32 %v876_v13, %v61_v14 }
  0x8a   :  { %119 = vrot.lane.b32.xlu0 %v96_v12, %s795_s19  ;;  %v98_v16 = vadd.f32 %v96_v12, %v879_v15 }
  0x8c   :  { %v693_v17 = vmul.f32 -1.442695, %v98_v16 }
  0x8e   :  { %716 = vpow2.f32 %v693_v17 }
  0x94   :  { %v717_v18 = vpop.eup %716 }
  0x95   :  { %v102_v19 = vadd.f32 1.0, %v717_v18 }
  0x97   :  { %718 = vrcp.f32 %v102_v19  ;;  %v114_v25 = vand.u32 2147483648, %v102_v19  ;;  %vm108_vm2 = vweird.f32 %v102_v19  ;;  %v112_v26 = vand.u32 2147483647, %v102_v19 }
  0x99   :  { %v115_v28 = vor.u32 1.1754944e-38, %v114_v25  ;;  %vm113_vm4 = vcmp.eq.f32.partialorder %v112_v26, 8.507059e+37 }
  0x9d   :  { %v719_v20 = vpop.eup %718 }
  0x9e   :  { %v104_v21 = vmul.f32 %v719_v20, %v102_v19  ;;  %vm109_vm1 = vweird.f32 %v719_v20 }
  0x9f   :  { %vm110_vm3 = vmor %vm108_vm2, %vm109_vm1 }
  0xa0   :  { %v105_v22 = vsub.f32 1.0, %v104_v21 }
  0xa2   :  { %v106_v23 = vmul.f32 %v719_v20, %v105_v22 }
  0xa4   :  { %v107_v24 = vadd.f32 %v719_v20, %v106_v23 }
  0xa6   :  { %v111_v27 = vsel %vm110_vm3, %v719_v20, %v107_v24 }
  0xa7   :  { %v116_v30 = vsel %vm113_vm4, %v115_v28, %v111_v27 }
  0xa8   :  { %v129_v35 = vsub.f32 1.0, %v116_v30  ;;  %v135_v37 = vmul.f32 0.0, %v116_v30 }
  0xfc   :  { %v120_v29 = vpop.permute.xlu0 %119 }
  0xfd   :  { %v122_v31 = vmul.f32 %v120_v29, %v116_v30 }
  0xff   :  { %124 = vrot.lane.b32.xlu0 %v122_v31, %s795_s19 }
 0x171   :  { %v125_v32 = vpop.permute.xlu0 %124 }
 0x172   :  { %v127_v33 = vadd.f32 %v125_v32, %v879_v15 }
 0x174   :  { %720 = vtanh.f32 %v127_v33 }
 0x17a   :  { %v721_v34 = vpop.eup %720 }
 0x17b   :  { %131 = vrot.lane.b32.xlu1 %v721_v34, %s796_s2 }
 0x1ed   :  { %v132_v36 = vpop.permute.xlu1 %131 }
 0x1ee   :  { %v134_v38 = vmul.f32 %v132_v36, %v129_v35 }
 0x1f0   :  { %v136_v39 = vadd.f32 %v135_v37, %v134_v38 }
 0x1f2   :  { %138 = vrot.lane.b32.xlu1 %v136_v39, %s796_s2  ;;  %v201_v56 = vrot.slane %v136_v39, 6 }
 0x264   :  { %v139_v40 = vpop.permute.xlu1 %138 }
 0x265   :  { %694 = vmatmul.msk.f32.vlgmr.msra.gmra.mxu2 %vm37_vm0, %v139_v40 }
 0x2e8   :  { %v159_v41 = vpop.f32.mrf.mxu2 }
 0x2e9   :  { %v160_v42 = vadd.f32 %v869_v10, %v159_v41 }
 0x2eb   :  { %v163_v43 = vrot.slane %v160_v42, 6 }
 0x2ed   :  { %v165_v44 = vadd.f32 %v163_v43, %v879_v15  ;;  %185 = vrot.lane.b32.xlu2 %v163_v43, %s795_s19 }
 0x2ef   :  { %v695_v45 = vmul.f32 -1.442695, %v165_v44 }
 0x2f1   :  { %722 = vpow2.f32 %v695_v45 }
 0x2f7   :  { %v723_v46 = vpop.eup %722 }
 0x2f8   :  { %v169_v47 = vadd.f32 1.0, %v723_v46 }
 0x2fa   :  { %724 = vrcp.f32 %v169_v47  ;;  %v181_v51 = vand.u32 2147483648, %v169_v47  ;;  %v179_v53 = vand.u32 2147483647, %v169_v47  ;;  %vm175_vm6 = vweird.f32 %v169_v47 }
 0x2fc   :  { %v182_v55 = vor.u32 1.1754944e-38, %v181_v51  ;;  %vm180_vm8 = vcmp.eq.f32.partialorder %v179_v53, 8.507059e+37 }
 0x300   :  { %v725_v48 = vpop.eup %724 }
 0x301   :  { %v171_v49 = vmul.f32 %v725_v48, %v169_v47  ;;  %vm176_vm5 = vweird.f32 %v725_v48 }
 0x302   :  { %vm177_vm7 = vmor %vm175_vm6, %vm176_vm5 }
 0x303   :  { %v172_v50 = vsub.f32 1.0, %v171_v49 }
 0x305   :  { %v173_v52 = vmul.f32 %v725_v48, %v172_v50 }
 0x307   :  { %v174_v54 = vadd.f32 %v725_v48, %v173_v52 }
 0x309   :  { %v178_v57 = vsel %vm177_vm7, %v725_v48, %v174_v54 }
 0x30a   :  { %v183_v58 = vsel %vm180_vm8, %v182_v55, %v178_v57 }
 0x30b   :  { %v203_v59 = vmul.f32 %v201_v56, %v183_v58  ;;  %v195_v1 = vsub.f32 1.0, %v183_v58 }
 0x347   :  { %v186_v60 = vpop.permute.xlu2 %185 }
 0x348   :  { %v188_v61 = vmul.f32 %v186_v60, %v183_v58 }
 0x34a   :  { %190 = vrot.lane.b32.xlu2 %v188_v61, %s795_s19 }
 0x3a4   :  { %v191_v62 = vpop.permute.xlu2 %190 }
 0x3a5   :  { %v193_v63 = vadd.f32 %v191_v62, %v879_v15 }
 0x3a7   :  { %726 = vtanh.f32 %v193_v63 }
 0x3ad   :  { %v727_v0 = vpop.eup %726 }
 0x3ae   :  { %197 = vrot.lane.b32.xlu0 %v727_v0, %s796_s2 }
 0x420   :  { %v198_v2 = vpop.permute.xlu0 %197 }
 0x421   :  { %v200_v3 = vmul.f32 %v198_v2, %v195_v1 }
 0x423   :  { %v204_v4 = vadd.f32 %v203_v59, %v200_v3 }
 0x425   :  { %v206_v5 = vrot.slane %v204_v4, 2  ;;  %v270_v25 = vrot.slane %v204_v4, 6 }
 0x427   :  { %207 = vrot.lane.b32.xlu1 %v206_v5, %s796_s2  ;;  %v28_v5 = vld [vmem:[%s971_s0 + $0x8] sm:$0xff] }
 0x428   :  { %692 = vmatmul.msk.f32.gmra.mxu0 %vm37_vm0, %v28_v5 }
 0x499   :  { %v208_v6 = vpop.permute.xlu1 %207 }
 0x49a   :  { %696 = vmatmul.msk.f32.vlgmr.msra.gmra.mxu3 %vm37_vm0, %v208_v6 }
 0x51d   :  { %v228_v7 = vpop.f32.mrf.mxu3 }
 0x51e   :  { %v229_v8 = vadd.f32 %v869_v10, %v228_v7 }
 0x520   :  { %v232_v9 = vrot.slane %v229_v8, 4  ;;  %v64_v8 = vpop.f32.mrf.mxu0 }
 0x522   :  { %v234_v11 = vadd.f32 %v232_v9, %v879_v15  ;;  %254 = vrot.lane.b32.xlu2 %v232_v9, %s795_s19  ;;  %v918_v9 = vadd.f32 %v876_v13, %v64_v8 }
 0x524   :  { %v697_v12 = vmul.f32 -1.442695, %v234_v11 }
 0x526   :  { %728 = vpow2.f32 %v697_v12 }
 0x52c   :  { %v729_v14 = vpop.eup %728 }
 0x52d   :  { %v238_v16 = vadd.f32 1.0, %v729_v14 }
 0x52f   :  { %730 = vrcp.f32 %v238_v16  ;;  %v250_v20 = vand.u32 2147483648, %v238_v16  ;;  %v248_v22 = vand.u32 2147483647, %v238_v16  ;;  %vm244_vm10 = vweird.f32 %v238_v16 }
 0x531   :  { %v251_v24 = vor.u32 1.1754944e-38, %v250_v20  ;;  %vm249_vm12 = vcmp.eq.f32.partialorder %v248_v22, 8.507059e+37 }
 0x535   :  { %v731_v17 = vpop.eup %730 }
 0x536   :  { %v240_v18 = vmul.f32 %v731_v17, %v238_v16  ;;  %vm245_vm9 = vweird.f32 %v731_v17 }
 0x537   :  { %vm246_vm11 = vmor %vm244_vm10, %vm245_vm9 }
 0x538   :  { %v241_v19 = vsub.f32 1.0, %v240_v18 }
 0x53a   :  { %v242_v21 = vmul.f32 %v731_v17, %v241_v19 }
 0x53c   :  { %v243_v23 = vadd.f32 %v731_v17, %v242_v21 }
 0x53e   :  { %v247_v26 = vsel %vm246_vm11, %v731_v17, %v243_v23 }
 0x53f   :  { %v252_v27 = vsel %vm249_vm12, %v251_v24, %v247_v26 }
 0x540   :  { %v272_v28 = vmul.f32 %v270_v25, %v252_v27  ;;  %v264_v34 = vsub.f32 1.0, %v252_v27 }
 0x57c   :  { %v255_v29 = vpop.permute.xlu2 %254 }
 0x57d   :  { %v257_v30 = vmul.f32 %v255_v29, %v252_v27 }
 0x57f   :  { %259 = vrot.lane.b32.xlu0 %v257_v30, %s795_s19 }
 0x5f1   :  { %v260_v31 = vpop.permute.xlu0 %259 }
 0x5f2   :  { %v262_v32 = vadd.f32 %v260_v31, %v879_v15 }
 0x5f4   :  { %732 = vtanh.f32 %v262_v32 }
 0x5fa   :  { %v733_v33 = vpop.eup %732 }
 0x5fb   :  { %266 = vrot.lane.b32.xlu1 %v733_v33, %s796_s2 }
 0x66d   :  { %v267_v35 = vpop.permute.xlu1 %266 }
 0x66e   :  { %v269_v36 = vmul.f32 %v267_v35, %v264_v34 }
 0x670   :  { %v273_v37 = vadd.f32 %v272_v28, %v269_v36 }
 0x672   :  { %v275_v38 = vrot.slane %v273_v37, 4  ;;  %v339_v62 = vrot.slane %v273_v37, 6 }
 0x674   :  { %276 = vrot.lane.b32.xlu2 %v275_v38, %s796_s2 }
 0x6ce   :  { %v277_v39 = vpop.permute.xlu2 %276 }
 0x6cf   :  { %698 = vmatmul.msk.f32.vlgmr.msrb.gmra.mxu1 %vm37_vm0, %v277_v39 }
 0x74c   :  { %v297_v40 = vpop.f32.mrf.mxu1 }
 0x74d   :  { %v298_v41 = vadd.f32 %v869_v10, %v297_v40 }
 0x74f   :  { %v301_v42 = vrot.slane %v298_v41, 2 }
 0x751   :  { %323 = vrot.lane.b32.xlu0 %v301_v42, %s795_s19  ;;  %v303_v43 = vadd.f32 %v301_v42, %v879_v15 }
 0x753   :  { %v699_v44 = vmul.f32 -1.442695, %v303_v43 }
 0x755   :  { %734 = vpow2.f32 %v699_v44 }
 0x75b   :  { %v735_v45 = vpop.eup %734 }
 0x75c   :  { %v307_v46 = vadd.f32 1.0, %v735_v45 }
 0x75e   :  { %736 = vrcp.f32 %v307_v46  ;;  %v319_v52 = vand.u32 2147483648, %v307_v46  ;;  %vm313_vm14 = vweird.f32 %v307_v46  ;;  %v317_v53 = vand.u32 2147483647, %v307_v46 }
 0x760   :  { %v320_v55 = vor.u32 1.1754944e-38, %v319_v52  ;;  %vm318_vm1 = vcmp.eq.f32.partialorder %v317_v53, 8.507059e+37 }
 0x764   :  { %v737_v47 = vpop.eup %736 }
 0x765   :  { %v309_v48 = vmul.f32 %v737_v47, %v307_v46  ;;  %vm314_vm13 = vweird.f32 %v737_v47 }
 0x766   :  { %vm315_vm15 = vmor %vm313_vm14, %vm314_vm13 }
 0x767   :  { %v310_v49 = vsub.f32 1.0, %v309_v48 }
 0x769   :  { %v311_v50 = vmul.f32 %v737_v47, %v310_v49 }
 0x76b   :  { %v312_v51 = vadd.f32 %v737_v47, %v311_v50 }
 0x76d   :  { %v316_v54 = vsel %vm315_vm15, %v737_v47, %v312_v51 }
 0x76e   :  { %v321_v57 = vsel %vm318_vm1, %v320_v55, %v316_v54 }
 0x76f   :  { %v333_v63 = vsub.f32 1.0, %v321_v57  ;;  %v341_v1 = vmul.f32 %v339_v62, %v321_v57 }
 0x7c3   :  { %v324_v56 = vpop.permute.xlu0 %323 }
 0x7c4   :  { %v326_v58 = vmul.f32 %v324_v56, %v321_v57 }
 0x7c6   :  { %328 = vrot.lane.b32.xlu1 %v326_v58, %s795_s19 }
 0x838   :  { %v329_v59 = vpop.permute.xlu1 %328 }
 0x839   :  { %v331_v60 = vadd.f32 %v329_v59, %v879_v15 }
 0x83b   :  { %738 = vtanh.f32 %v331_v60 }
 0x841   :  { %v739_v61 = vpop.eup %738 }
 0x842   :  { %335 = vrot.lane.b32.xlu2 %v739_v61, %s796_s2 }
 0x89c   :  { %v336_v0 = vpop.permute.xlu2 %335 }
 0x89d   :  { %v338_v2 = vmul.f32 %v336_v0, %v333_v63 }
 0x89f   :  { %v342_v3 = vadd.f32 %v341_v1, %v338_v2 }
 0x8a1   :  { %v344_v4 = vrot.slane %v342_v3, 6 }
 0x8a3   :  { %345 = vrot.lane.b32.xlu0 %v344_v4, %s796_s2 }
 0x915   :  { %v346_v15 = vpop.permute.xlu0 %345 }
 0x916   :  { %700 = vmatmul.msk.f32.vlgmr.msrb.gmra.mxu2 %vm37_vm0, %v346_v15 }
 0x999   :  { %v366_v6 = vpop.f32.mrf.mxu2 }
 0x99a   :  { %v367_v7 = vadd.f32 %v869_v10, %v366_v6 }
 0x99c   :  { %390 = vrot.lane.b32.xlu1 %v367_v7, %s795_s19  ;;  %v369_v11 = vadd.f32 %v367_v7, %v918_v9 }
 0x99e   :  { %v701_v12 = vmul.f32 -1.442695, %v369_v11 }
 0x9a0   :  { %740 = vpow2.f32 %v701_v12 }
 0x9a6   :  { %v741_v14 = vpop.eup %740 }
 0x9a7   :  { %v373_v16 = vadd.f32 1.0, %v741_v14 }
 0x9a9   :  { %742 = vrcp.f32 %v373_v16  ;;  %v385_v22 = vand.u32 2147483648, %v373_v16  ;;  %vm379_vm3 = vweird.f32 %v373_v16  ;;  %v383_v23 = vand.u32 2147483647, %v373_v16 }
 0x9ab   :  { %v386_v13 = vor.u32 1.1754944e-38, %v385_v22  ;;  %vm384_vm5 = vcmp.eq.f32.partialorder %v383_v23, 8.507059e+37 }
 0x9af   :  { %v743_v17 = vpop.eup %742 }
 0x9b0   :  { %v375_v18 = vmul.f32 %v743_v17, %v373_v16  ;;  %vm380_vm2 = vweird.f32 %v743_v17 }
 0x9b1   :  { %vm381_vm4 = vmor %vm379_vm3, %vm380_vm2  ;;  %vm649_vm3 = vcmask 17408  }
 0x9b2   :  { %v376_v19 = vsub.f32 1.0, %v375_v18 }
 0x9b4   :  { %v377_v20 = vmul.f32 %v743_v17, %v376_v19 }
 0x9b6   :  { %v378_v21 = vadd.f32 %v743_v17, %v377_v20 }
 0x9b8   :  { %v382_v24 = vsel %vm381_vm4, %v743_v17, %v378_v21 }
 0x9b9   :  { %v387_v26 = vsel %vm384_vm5, %v386_v13, %v382_v24 }
 0x9ba   :  { %v400_v31 = vsub.f32 1.0, %v387_v26  ;;  %v407_v33 = vmul.f32 %v387_v26, %v344_v4 }
 0xa0e   :  { %v391_v25 = vpop.permute.xlu1 %390 }
 0xa0f   :  { %v393_v27 = vmul.f32 %v391_v25, %v387_v26 }
 0xa11   :  { %395 = vrot.lane.b32.xlu2 %v393_v27, %s795_s19 }
 0xa6b   :  { %v396_v28 = vpop.permute.xlu2 %395 }
 0xa6c   :  { %v398_v29 = vadd.f32 %v396_v28, %v918_v9 }
 0xa6e   :  { %744 = vtanh.f32 %v398_v29 }
 0xa74   :  { %v745_v30 = vpop.eup %744 }
 0xa75   :  { %402 = vrot.lane.b32.xlu0 %v745_v30, %s796_s2 }
 0xae7   :  { %v403_v32 = vpop.permute.xlu0 %402 }
 0xae8   :  { %v405_v34 = vmul.f32 %v403_v32, %v400_v31 }
 0xaea   :  { %v408_v35 = vadd.f32 %v407_v33, %v405_v34 }
 0xaec   :  { %410 = vrot.lane.b32.xlu1 %v408_v35, %s796_s2  ;;  %v473_v52 = vrot.slane %v408_v35, 6 }
 0xb5e   :  { %v411_v36 = vpop.permute.xlu1 %410 }
 0xb5f   :  { %702 = vmatmul.msk.f32.vlgmr.msrb.gmra.mxu3 %vm37_vm0, %v411_v36 }
 0xbe2   :  { %v431_v37 = vpop.f32.mrf.mxu3 }
 0xbe3   :  { %v432_v38 = vadd.f32 %v869_v10, %v431_v37 }
 0xbe5   :  { %v435_v39 = vrot.slane %v432_v38, 6 }
 0xbe7   :  { %v437_v40 = vadd.f32 %v435_v39, %v918_v9  ;;  %457 = vrot.lane.b32.xlu2 %v435_v39, %s795_s19 }
 0xbe9   :  { %v703_v41 = vmul.f32 -1.442695, %v437_v40 }
 0xbeb   :  { %746 = vpow2.f32 %v703_v41 }
 0xbf1   :  { %v747_v42 = vpop.eup %746 }
 0xbf2   :  { %v441_v43 = vadd.f32 1.0, %v747_v42 }
 0xbf4   :  { %748 = vrcp.f32 %v441_v43  ;;  %v453_v47 = vand.u32 2147483648, %v441_v43  ;;  %v451_v49 = vand.u32 2147483647, %v441_v43  ;;  %vm447_vm7 = vweird.f32 %v441_v43 }
 0xbf6   :  { %v454_v51 = vor.u32 1.1754944e-38, %v453_v47  ;;  %vm452_vm9 = vcmp.eq.f32.partialorder %v451_v49, 8.507059e+37 }
 0xbfa   :  { %v749_v44 = vpop.eup %748 }
 0xbfb   :  { %v443_v45 = vmul.f32 %v749_v44, %v441_v43  ;;  %vm448_vm6 = vweird.f32 %v749_v44 }
 0xbfc   :  { %vm449_vm8 = vmor %vm447_vm7, %vm448_vm6 }
 0xbfd   :  { %v444_v46 = vsub.f32 1.0, %v443_v45 }
 0xbff   :  { %v445_v48 = vmul.f32 %v749_v44, %v444_v46 }
 0xc01   :  { %v446_v50 = vadd.f32 %v749_v44, %v445_v48 }
 0xc03   :  { %v450_v53 = vsel %vm449_vm8, %v749_v44, %v446_v50 }
 0xc04   :  { %v455_v54 = vsel %vm452_vm9, %v454_v51, %v450_v53 }
 0xc05   :  { %v475_v55 = vmul.f32 %v473_v52, %v455_v54  ;;  %v467_v61 = vsub.f32 1.0, %v455_v54 }
 0xc41   :  { %v458_v56 = vpop.permute.xlu2 %457 }
 0xc42   :  { %v460_v57 = vmul.f32 %v458_v56, %v455_v54  ;;  %v618_v56 = vld [vmem:[%s976_s5 + $0x18] sm:$0xff] }
 0xc43   :  { %641 = vmatpush.msra.mxu2 %v618_v56 }
 0xc44   :  { %462 = vrot.lane.b32.xlu0 %v460_v57, %s795_s19  ;;  %v617_v57 = vld [vmem:[%s976_s5 + $0x10] sm:$0xff] }
 0xc45   :  { %642 = vmatpush.msra.mxu2 %v617_v57 }
 0xcb6   :  { %v463_v58 = vpop.permute.xlu0 %462 }
 0xcb7   :  { %v465_v59 = vadd.f32 %v463_v58, %v918_v9  ;;  %v616_v58 = vld [vmem:[%s976_s5 + $0x8] sm:$0xff] }
 0xcb8   :  { %643 = vmatpush.msra.mxu2 %v616_v58 }
 0xcb9   :  { %750 = vtanh.f32 %v465_v59 }
 0xcbf   :  { %v751_v60 = vpop.eup %750 }
 0xcc0   :  { %469 = vrot.lane.b32.xlu1 %v751_v60, %s796_s2 }
 0xd32   :  { %v470_v62 = vpop.permute.xlu1 %469 }
 0xd33   :  { %v472_v63 = vmul.f32 %v470_v62, %v467_v61 }
 0xd35   :  { %v476_v0 = vadd.f32 %v475_v55, %v472_v63 }
 0xd37   :  { %v478_v1 = vrot.slane %v476_v0, 2  ;;  %v542_v27 = vrot.slane %v476_v0, 6 }
 0xd39   :  { %479 = vrot.lane.b32.xlu2 %v478_v1, %s796_s2 }
 0xd93   :  { %v480_v2 = vpop.permute.xlu2 %479 }
 0xd94   :  { %704 = vmatmul.msk.f32.vlgmr.msrb.gmra.mxu0 %vm37_vm0, %v480_v2 }
 0xe11   :  { %v500_v3 = vpop.f32.mrf.mxu0 }
 0xe12   :  { %v501_v4 = vadd.f32 %v869_v10, %v500_v3  ;;  %v715_v3 = vld [vmem:[%s977_s6] ss:$0 sm:$0xff] }
 0xe14   :  { %v504_v5 = vrot.slane %v501_v4, 4 }
 0xe16   :  { %526 = vrot.lane.b32.xlu0 %v504_v5, %s795_s19  ;;  %v506_v15 = vadd.f32 %v504_v5, %v918_v9 }
 0xe18   :  { %v705_v6 = vmul.f32 -1.442695, %v506_v15 }
 0xe1a   :  { %752 = vpow2.f32 %v705_v6 }
 0xe20   :  { %v753_v7 = vpop.eup %752 }
 0xe21   :  { %v510_v8 = vadd.f32 1.0, %v753_v7 }
 0xe23   :  { %754 = vrcp.f32 %v510_v8  ;;  %v522_v18 = vand.u32 2147483648, %v510_v8  ;;  %vm516_vm11 = vweird.f32 %v510_v8  ;;  %v520_v19 = vand.u32 2147483647, %v510_v8 }
 0xe25   :  { %v523_v21 = vor.u32 1.1754944e-38, %v522_v18  ;;  %vm521_vm13 = vcmp.eq.f32.partialorder %v520_v19, 8.507059e+37 }
 0xe29   :  { %v755_v11 = vpop.eup %754 }
 0xe2a   :  { %v512_v12 = vmul.f32 %v755_v11, %v510_v8  ;;  %vm517_vm10 = vweird.f32 %v755_v11 }
 0xe2b   :  { %vm518_vm12 = vmor %vm516_vm11, %vm517_vm10 }
 0xe2c   :  { %v513_v14 = vsub.f32 1.0, %v512_v12 }
 0xe2e   :  { %v514_v16 = vmul.f32 %v755_v11, %v513_v14 }
 0xe30   :  { %v515_v17 = vadd.f32 %v755_v11, %v514_v16 }
 0xe32   :  { %v519_v20 = vsel %vm518_vm12, %v755_v11, %v515_v17 }
 0xe33   :  { %v524_v23 = vsel %vm521_vm13, %v523_v21, %v519_v20 }
 0xe34   :  { %v536_v28 = vsub.f32 1.0, %v524_v23  ;;  %v544_v30 = vmul.f32 %v542_v27, %v524_v23 }
 0xe88   :  { %v527_v22 = vpop.permute.xlu0 %526 }
 0xe89   :  { %v529_v24 = vmul.f32 %v527_v22, %v524_v23 }
 0xe8b   :  { %531 = vrot.lane.b32.xlu1 %v529_v24, %s795_s19 }
 0xefd   :  { %v532_v13 = vpop.permute.xlu1 %531 }
 0xefe   :  { %v534_v25 = vadd.f32 %v532_v13, %v918_v9 }
 0xf00   :  { %756 = vtanh.f32 %v534_v25 }
 0xf06   :  { %v757_v26 = vpop.eup %756 }
 0xf07   :  { %538 = vrot.lane.b32.xlu2 %v757_v26, %s796_s2 }
 0xf61   :  { %v539_v29 = vpop.permute.xlu2 %538 }
 0xf62   :  { %v541_v31 = vmul.f32 %v539_v29, %v536_v28 }
 0xf64   :  { %v545_v32 = vadd.f32 %v544_v30, %v541_v31 }
 0xf66   :  { %v547_v33 = vrot.slane %v545_v32, 4  ;;  %v611_v59 = vrot.slane %v545_v32, 6 }
 0xf68   :  { %548 = vrot.lane.b32.xlu0 %v547_v33, %s796_s2 }
 0xfda   :  { %v549_v34 = vpop.permute.xlu0 %548 }
 0xfdb   :  { %706 = vmatmul.msk.f32.vlgmr.msra.gmra.mxu1 %vm37_vm0, %v549_v34 }
0x1058   :  { %v569_v35 = vpop.f32.mrf.mxu1 }
0x1059   :  { %v570_v36 = vadd.f32 %v869_v10, %v569_v35 }
0x105b   :  { %v573_v37 = vrot.slane %v570_v36, 2 }
0x105d   :  { %595 = vrot.lane.b32.xlu1 %v573_v37, %s795_s19  ;;  %v575_v38 = vadd.f32 %v573_v37, %v918_v9 }
0x105f   :  { %v707_v39 = vmul.f32 -1.442695, %v575_v38 }
0x1061   :  { %758 = vpow2.f32 %v707_v39 }
0x1067   :  { %v759_v40 = vpop.eup %758 }
0x1068   :  { %v579_v41 = vadd.f32 1.0, %v759_v40 }
0x106a   :  { %760 = vrcp.f32 %v579_v41  ;;  %v591_v47 = vand.u32 2147483648, %v579_v41  ;;  %vm585_vm15 = vweird.f32 %v579_v41  ;;  %v589_v48 = vand.u32 2147483647, %v579_v41 }
0x106c   :  { %v592_v49 = vor.u32 1.1754944e-38, %v591_v47  ;;  %vm590_vm2 = vcmp.eq.f32.partialorder %v589_v48, 8.507059e+37 }
0x1070   :  { %v761_v42 = vpop.eup %760 }
0x1071   :  { %v581_v43 = vmul.f32 %v761_v42, %v579_v41  ;;  %vm586_vm14 = vweird.f32 %v761_v42 }
0x1072   :  { %vm587_vm1 = vmor %vm585_vm15, %vm586_vm14 }
0x1073   :  { %v582_v44 = vsub.f32 1.0, %v581_v43 }
0x1075   :  { %v583_v45 = vmul.f32 %v761_v42, %v582_v44 }
0x1077   :  { %v584_v46 = vadd.f32 %v761_v42, %v583_v45 }
0x1079   :  { %v588_v10 = vsel %vm587_vm1, %v761_v42, %v584_v46 }
0x107a   :  { %v593_v51 = vsel %vm590_vm2, %v592_v49, %v588_v10 }
0x107b   :  { %v605_v60 = vsub.f32 1.0, %v593_v51  ;;  %v613_v62 = vmul.f32 %v611_v59, %v593_v51 }
0x10cf   :  { %v596_v50 = vpop.permute.xlu1 %595 }
0x10d0   :  { %v598_v52 = vmul.f32 %v596_v50, %v593_v51 }
0x10d2   :  { %600 = vrot.lane.b32.xlu2 %v598_v52, %s795_s19 }
0x112c   :  { %v601_v53 = vpop.permute.xlu2 %600 }
0x112d   :  { %v603_v54 = vadd.f32 %v601_v53, %v918_v9  ;;  %v615_v9 = vld [vmem:[%s976_s5] sm:$0xff]  ;;  %s797_s5 = smov [#allocation2]  }
0x112e   :  { %644 = vmatpush.msra.mxu2 %v615_v9  ;;  %s680_s6 = sshll.u32 %s797_s5, 4  ;;  %s681_s6 = int_to_ptr.vmem [resolvable:$true] %s680_s6 }
0x112f   :  { %762 = vtanh.f32 %v603_v54 }
0x1135   :  { %v763_v55 = vpop.eup %762 }
0x1136   :  { %607 = vrot.lane.b32.xlu0 %v763_v55, %s796_s2 }
0x11a8   :  { %v608_v61 = vpop.permute.xlu0 %607 }
0x11a9   :  { %v610_v63 = vmul.f32 %v608_v61, %v605_v60 }
0x11ab   :  { %v614_v0 = vadd.f32 %v613_v62, %v610_v63 }
0x11ad   :  { %v624_v1 = vrot.slane %v614_v0, 6 }
0x11af   :  { %625 = vrot.lane.b32.xlu1 %v624_v1, %s796_s2 }
0x1221   :  { %v626_v2 = vpop.permute.xlu1 %625 }
0x1222   :  { %708 = vmatmul.msk.f32.vlgmr.msra.gmra.mxu2 %vm37_vm0, %v626_v2 }
0x12a5   :  { %v646_v4 = vpop.f32.mrf.mxu2 }
0x12a6   :  { %v647_v5 = vadd.f32 %v715_v3, %v646_v4 }
0x12a8   :  { %v650_v15 = vsel %vm649_vm3, %v647_v5, -inf }
0x12a9   :  { %651 = vmax.xlane.f32.xlu2 %v650_v15 }
0x131c   :  { %v652_v6 = vpop.xlane.xlu2 %651 }
0x131d   :  { %v653_v7 = vsub.f32 %v647_v5, %v652_v6 }
0x131f   :  { %v654_v8 = vmul.f32 1.442695, %v653_v7 }
0x1321   :  { %764 = vpow2.f32 %v654_v8 }
0x1327   :  { %v765_v11 = vpop.eup %764 }
0x1328   :  { %v656_v12 = vsel %vm649_vm3, %v765_v11, 0.0 }
0x1329   :  { %657 = vadd.xlane.f32.xlu0 %v656_v12 }
0x139c   :  { %v658_v14 = vpop.xlane.xlu0 %657 }
0x139d   :  { %766 = vrcp.f32 %v658_v14  ;;  %v670_v19 = vand.u32 2147483648, %v658_v14  ;;  %v668_v21 = vand.u32 2147483647, %v658_v14  ;;  %vm664_vm4 = vweird.f32 %v658_v14 }
0x139f   :  { %v671_v23 = vor.u32 1.1754944e-38, %v670_v19  ;;  %vm669_vm6 = vcmp.eq.f32.partialorder %v668_v21, 8.507059e+37 }
0x13a3   :  { %v767_v16 = vpop.eup %766 }
0x13a4   :  { %v660_v17 = vmul.f32 %v767_v16, %v658_v14  ;;  %vm665_vm0 = vweird.f32 %v767_v16 }
0x13a5   :  { %vm666_vm5 = vmor %vm664_vm4, %vm665_vm0 }
0x13a6   :  { %v661_v18 = vsub.f32 1.0, %v660_v17 }
0x13a8   :  { %v662_v20 = vmul.f32 %v767_v16, %v661_v18 }
0x13aa   :  { %v663_v22 = vadd.f32 %v767_v16, %v662_v20 }
0x13ac   :  { %v667_v24 = vsel %vm666_vm5, %v767_v16, %v663_v22 }
0x13ad   :  { %v672_v13 = vsel %vm669_vm6, %v671_v23, %v667_v24 }
0x13ae   :  { %v673_v25 = vmul.f32 %v765_v11, %v672_v13 }
0x13b0   :  { %674 = vst.msk [vmem:[#allocation2] sm:$0x3] %vm649_vm3, %v673_v25 }
0x13b1   :  { %685 = dma.vmem_to_hbm [thread:$0]  %s681_s6, 32, %s683_s11, [#allocation3]  }
0x13b2   :  { %792 = dma.done.wait [#allocation3], 32  }
0x13b3   :  { %793 = vsyncadd [#allocation3], 4294967264 }
0x13b4   :  { %690 = vsyncpa [#allocation3], 1 }

// kernel: gru_forward.2
= control target key start
LH: loop header
LB: loop body
LE: loop exit
PB: predicated region body
PF: predicated region fallthrough
CT: control target
= control target key end

     0   :  { %vm28_vm0 = vcmask 130048   ;;  %v728_v7 = vmov 0.0   ;;  %s729_s7 = smov 64   ;;  %vm133_vm5 = vcmask 254976   ;;  %vm66_vm6 = vcmask 261120   ;;  %s911_s3 = inlined_call_operand.vmem [shape: f32[32,96], index: 3, kind: input, shape index: {}]   ;;  %s912_s1 = inlined_call_operand.vmem [shape: f32[16,96], index: 1, kind: input, shape index: {}]   ;;  %s913_s0 = inlined_call_operand.vmem [shape: f32[16,16], index: 0, kind: input, shape index: {}]   ;;  %s914_s2 = inlined_call_operand.vmem [shape: f32[1,96], index: 2, kind: input, shape index: {}]   ;;  %s915_s4 = inlined_call_operand.vmem [shape: f32[1,96], index: 4, kind: input, shape index: {}]   ;;  %s916_s5 = inlined_call_operand.vmem [shape: f32[8,2,32], index: 5, kind: output, shape index: {}]  }
   0x1   :  { %v61_v0 = vld [vmem:[%s911_s3 + $0x18] sm:$0xff]  ;;  %v60_v1 = vld [vmem:[%s911_s3 + $0x10] sm:$0xff]  ;;  %v23_v2 = vld [vmem:[%s912_s1 + $0x8] sm:$0xff] }
   0x2   :  { %82 = vmatpush.msra.mxu1 %v61_v0  ;;  %49 = vmatpush.msra.mxu0 %v23_v2  ;;  %v22_v3 = vld [vmem:[%s912_s1] sm:$0xff]  ;;  %v59_v4 = vld [vmem:[%s911_s3 + $0x8] sm:$0xff] }
   0x3   :  { %v20_v5 = vld [vmem:[%s913_s0] sm:$0xff]  ;;  %149 = vmatpush.msra.mxu2 %v61_v0  ;;  %224 = vmatpush.msra.mxu3 %v61_v0 }
   0x4   :  { %83 = vmatpush.msra.mxu1 %v60_v1  ;;  %50 = vmatpush.msra.mxu0 %v22_v3  ;;  %v58_v6 = vld [vmem:[%s911_s3] sm:$0xff] }
   0x5   :  { %651 = vmatmul.msk.f32.vlgmr.msra.gmra.mxu0 %vm28_vm0, %v20_v5  ;;  %150 = vmatpush.msra.mxu2 %v60_v1  ;;  %v786_v8 = vld [vmem:[%s915_s4] ss:$0 sm:$0xff] }
   0x6   :  { %84 = vmatpush.msra.mxu1 %v59_v4  ;;  %225 = vmatpush.msra.mxu3 %v60_v1  ;;  %v793_v11 = vld [vmem:[%s914_s2] ss:$0 sm:$0xff]  ;;  %s730_s2 = smov 96  }
   0x7   :  { %151 = vmatpush.msra.mxu2 %v59_v4  ;;  %516 = vmatpush.msrb.mxu0 %v61_v0 }
   0x8   :  { %85 = vmatpush.msra.mxu1 %v58_v6  ;;  %226 = vmatpush.msra.mxu3 %v59_v4 }
   0x9   :  { %86 = vmatmul.f32.vlgmr.msra.gmra.mxu1 %v728_v7  ;;  %152 = vmatpush.msra.mxu2 %v58_v6 }
   0xa   :  { %227 = vmatpush.msra.mxu3 %v58_v6  ;;  %299 = vmatpush.msrb.mxu1 %v61_v0 }
   0xb   :  { %374 = vmatpush.msrb.mxu2 %v61_v0  ;;  %517 = vmatpush.msrb.mxu0 %v60_v1 }
   0xc   :  { %442 = vmatpush.msrb.mxu3 %v61_v0  ;;  %300 = vmatpush.msrb.mxu1 %v60_v1 }
   0xd   :  { %375 = vmatpush.msrb.mxu2 %v60_v1  ;;  %518 = vmatpush.msrb.mxu0 %v59_v4 }
   0xe   :  { %443 = vmatpush.msrb.mxu3 %v60_v1  ;;  %301 = vmatpush.msrb.mxu1 %v59_v4 }
   0xf   :  { %376 = vmatpush.msrb.mxu2 %v59_v4  ;;  %519 = vmatpush.msrb.mxu0 %v58_v6 }
  0x10   :  { %444 = vmatpush.msrb.mxu3 %v59_v4  ;;  %302 = vmatpush.msrb.mxu1 %v58_v6 }
  0x11   :  { %377 = vmatpush.msrb.mxu2 %v58_v6 }
  0x12   :  { %445 = vmatpush.msrb.mxu3 %v58_v6  ;;  %590 = vmatpush.msra.mxu1 %v61_v0 }
  0x14   :  { %591 = vmatpush.msra.mxu1 %v60_v1 }
  0x16   :  { %592 = vmatpush.msra.mxu1 %v59_v4 }
  0x18   :  { %593 = vmatpush.msra.mxu1 %v58_v6 }
  0x82   :  { %v52_v12 = vpop.f32.mrf.mxu0 }
  0x83   :  { %v796_v13 = vadd.f32 %v793_v11, %v52_v12 }
  0x86   :  { %v87_v9 = vpop.f32.mrf.mxu1 }
  0x87   :  { %v88_v10 = vadd.f32 %v786_v8, %v87_v9 }
  0x89   :  { %111 = vrot.lane.b32.xlu0 %v88_v10, %s729_s7  ;;  %v90_v14 = vadd.f32 %v88_v10, %v796_v13 }
  0x8b   :  { %v653_v15 = vmul.f32 -1.442695, %v90_v14 }
  0x8d   :  { %680 = vpow2.f32 %v653_v15 }
  0x93   :  { %v681_v16 = vpop.eup %680 }
  0x94   :  { %v94_v17 = vadd.f32 1.0, %v681_v16 }
  0x96   :  { %682 = vrcp.f32 %v94_v17  ;;  %v106_v23 = vand.u32 2147483648, %v94_v17  ;;  %vm100_vm2 = vweird.f32 %v94_v17  ;;  %v104_v24 = vand.u32 2147483647, %v94_v17 }
  0x98   :  { %v107_v26 = vor.u32 1.1754944e-38, %v106_v23  ;;  %vm105_vm4 = vcmp.eq.f32.partialorder %v104_v24, 8.507059e+37 }
  0x9c   :  { %v683_v18 = vpop.eup %682 }
  0x9d   :  { %v96_v19 = vmul.f32 %v683_v18, %v94_v17  ;;  %vm101_vm1 = vweird.f32 %v683_v18 }
  0x9e   :  { %vm102_vm3 = vmor %vm100_vm2, %vm101_vm1 }
  0x9f   :  { %v97_v20 = vsub.f32 1.0, %v96_v19 }
  0xa1   :  { %v98_v21 = vmul.f32 %v683_v18, %v97_v20 }
  0xa3   :  { %v99_v22 = vadd.f32 %v683_v18, %v98_v21 }
  0xa5   :  { %v103_v25 = vsel %vm102_vm3, %v683_v18, %v99_v22 }
  0xa6   :  { %v108_v28 = vsel %vm105_vm4, %v107_v26, %v103_v25 }
  0xa7   :  { %v121_v33 = vsub.f32 1.0, %v108_v28  ;;  %v127_v35 = vmul.f32 0.0, %v108_v28 }
  0xfb   :  { %v112_v27 = vpop.permute.xlu0 %111 }
  0xfc   :  { %v114_v29 = vmul.f32 %v112_v27, %v108_v28 }
  0xfe   :  { %116 = vrot.lane.b32.xlu0 %v114_v29, %s729_s7 }
 0x170   :  { %v117_v30 = vpop.permute.xlu0 %116 }
 0x171   :  { %v119_v31 = vadd.f32 %v117_v30, %v796_v13 }
 0x173   :  { %684 = vtanh.f32 %v119_v31 }
 0x179   :  { %v685_v32 = vpop.eup %684 }
 0x17a   :  { %123 = vrot.lane.b32.xlu1 %v685_v32, %s730_s2 }
 0x1ec   :  { %v124_v34 = vpop.permute.xlu1 %123 }
 0x1ed   :  { %v126_v36 = vmul.f32 %v124_v34, %v121_v33 }
 0x1ef   :  { %v128_v37 = vadd.f32 %v127_v35, %v126_v36 }
 0x1f1   :  { %130 = vrot.lane.b32.xlu1 %v128_v37, %s730_s2  ;;  %v196_v54 = vrot.slane %v128_v37, 6 }
 0x263   :  { %v131_v38 = vpop.permute.xlu1 %130 }
 0x264   :  { %134 = vst.msk [vmem:[%s916_s5] sm:$0x3] %vm133_vm5, %v131_v38  ;;  %654 = vmatmul.msk.f32.vlgmr.msra.gmra.mxu2 %vm66_vm6, %v131_v38 }
 0x2e7   :  { %v154_v39 = vpop.f32.mrf.mxu2 }
 0x2e8   :  { %v155_v40 = vadd.f32 %v786_v8, %v154_v39 }
 0x2ea   :  { %v158_v41 = vrot.slane %v155_v40, 6 }
 0x2ec   :  { %v160_v42 = vadd.f32 %v158_v41, %v796_v13  ;;  %180 = vrot.lane.b32.xlu2 %v158_v41, %s729_s7 }
 0x2ee   :  { %v655_v43 = vmul.f32 -1.442695, %v160_v42 }
 0x2f0   :  { %686 = vpow2.f32 %v655_v43 }
 0x2f6   :  { %v687_v44 = vpop.eup %686 }
 0x2f7   :  { %v164_v45 = vadd.f32 1.0, %v687_v44 }
 0x2f9   :  { %688 = vrcp.f32 %v164_v45  ;;  %v176_v49 = vand.u32 2147483648, %v164_v45  ;;  %v174_v51 = vand.u32 2147483647, %v164_v45  ;;  %vm170_vm8 = vweird.f32 %v164_v45 }
 0x2fb   :  { %v177_v53 = vor.u32 1.1754944e-38, %v176_v49  ;;  %vm175_vm10 = vcmp.eq.f32.partialorder %v174_v51, 8.507059e+37 }
 0x2ff   :  { %v689_v46 = vpop.eup %688 }
 0x300   :  { %v166_v47 = vmul.f32 %v689_v46, %v164_v45  ;;  %vm171_vm7 = vweird.f32 %v689_v46 }
 0x301   :  { %vm172_vm9 = vmor %vm170_vm8, %vm171_vm7 }
 0x302   :  { %v167_v48 = vsub.f32 1.0, %v166_v47 }
 0x304   :  { %v168_v50 = vmul.f32 %v689_v46, %v167_v48 }
 0x306   :  { %v169_v52 = vadd.f32 %v689_v46, %v168_v50 }
 0x308   :  { %v173_v55 = vsel %vm172_vm9, %v689_v46, %v169_v52 }
 0x309   :  { %v178_v56 = vsel %vm175_vm10, %v177_v53, %v173_v55 }
 0x30a   :  { %v198_v57 = vmul.f32 %v196_v54, %v178_v56  ;;  %v190_v63 = vsub.f32 1.0, %v178_v56 }
 0x346   :  { %v181_v58 = vpop.permute.xlu2 %180 }
 0x347   :  { %v183_v59 = vmul.f32 %v181_v58, %v178_v56 }
 0x349   :  { %185 = vrot.lane.b32.xlu2 %v183_v59, %s729_s7 }
 0x3a3   :  { %v186_v60 = vpop.permute.xlu2 %185 }
 0x3a4   :  { %v188_v61 = vadd.f32 %v186_v60, %v796_v13 }
 0x3a6   :  { %690 = vtanh.f32 %v188_v61 }
 0x3ac   :  { %v691_v62 = vpop.eup %690 }
 0x3ad   :  { %192 = vrot.lane.b32.xlu0 %v691_v62, %s730_s2 }
 0x41f   :  { %v193_v0 = vpop.permute.xlu0 %192 }
 0x420   :  { %v195_v1 = vmul.f32 %v193_v0, %v190_v63 }
 0x422   :  { %v814_v2 = vadd.f32 %v198_v57, %v195_v1 }
 0x424   :  { %v207_v3 = vrot.slane %v814_v2, 2  ;;  %v271_v31 = vrot.slane %v814_v2, 6 }
 0x426   :  { %208 = vrot.lane.b32.xlu1 %v207_v3, %s730_s2 }
 0x498   :  { %v209_v4 = vpop.permute.xlu1 %208 }
 0x499   :  { %657 = vmatmul.msk.f32.vlgmr.msra.gmra.mxu3 %vm66_vm6, %v209_v4 }
 0x51c   :  { %v229_v5 = vpop.f32.mrf.mxu3 }
 0x51d   :  { %v230_v6 = vadd.f32 %v786_v8, %v229_v5 }
 0x51f   :  { %v233_v7 = vrot.slane %v230_v6, 4 }
 0x521   :  { %255 = vrot.lane.b32.xlu2 %v233_v7, %s729_s7  ;;  %v235_v9 = vadd.f32 %v233_v7, %v796_v13 }
 0x523   :  { %v658_v10 = vmul.f32 -1.442695, %v235_v9 }
 0x525   :  { %692 = vpow2.f32 %v658_v10 }
 0x52b   :  { %v693_v12 = vpop.eup %692 }
 0x52c   :  { %v239_v14 = vadd.f32 1.0, %v693_v12 }
 0x52e   :  { %694 = vrcp.f32 %v239_v14  ;;  %v251_v20 = vand.u32 2147483648, %v239_v14  ;;  %vm245_vm12 = vweird.f32 %v239_v14  ;;  %v249_v21 = vand.u32 2147483647, %v239_v14 }
 0x530   :  { %v252_v23 = vor.u32 1.1754944e-38, %v251_v20  ;;  %vm250_vm14 = vcmp.eq.f32.partialorder %v249_v21, 8.507059e+37 }
 0x534   :  { %v695_v15 = vpop.eup %694 }
 0x535   :  { %v241_v16 = vmul.f32 %v695_v15, %v239_v14  ;;  %vm246_vm11 = vweird.f32 %v695_v15 }
 0x536   :  { %vm247_vm13 = vmor %vm245_vm12, %vm246_vm11 }
 0x537   :  { %v242_v17 = vsub.f32 1.0, %v241_v16 }
 0x539   :  { %v243_v18 = vmul.f32 %v695_v15, %v242_v17 }
 0x53b   :  { %v244_v19 = vadd.f32 %v695_v15, %v243_v18 }
 0x53d   :  { %v248_v22 = vsel %vm247_vm13, %v695_v15, %v244_v19 }
 0x53e   :  { %v253_v25 = vsel %vm250_vm14, %v252_v23, %v248_v22 }
 0x53f   :  { %v265_v30 = vsub.f32 1.0, %v253_v25  ;;  %v273_v33 = vmul.f32 %v271_v31, %v253_v25 }
 0x57b   :  { %v256_v24 = vpop.permute.xlu2 %255 }
 0x57c   :  { %v258_v26 = vmul.f32 %v256_v24, %v253_v25 }
 0x57e   :  { %260 = vrot.lane.b32.xlu0 %v258_v26, %s729_s7 }
 0x5f0   :  { %v261_v27 = vpop.permute.xlu0 %260 }
 0x5f1   :  { %v263_v28 = vadd.f32 %v261_v27, %v796_v13 }
 0x5f3   :  { %696 = vtanh.f32 %v263_v28 }
 0x5f9   :  { %v697_v29 = vpop.eup %696 }
 0x5fa   :  { %267 = vrot.lane.b32.xlu1 %v697_v29, %s730_s2 }
 0x66c   :  { %v268_v32 = vpop.permute.xlu1 %267 }
 0x66d   :  { %v270_v34 = vmul.f32 %v268_v32, %v265_v30 }
 0x66f   :  { %v826_v35 = vadd.f32 %v273_v33, %v270_v34 }
 0x671   :  { %v282_v36 = vrot.slane %v826_v35, 4  ;;  %v346_v61 = vrot.slane %v826_v35, 6 }
 0x673   :  { %283 = vrot.lane.b32.xlu2 %v282_v36, %s730_s2 }
 0x6cd   :  { %v284_v37 = vpop.permute.xlu2 %283 }
 0x6ce   :  { %660 = vmatmul.msk.f32.vlgmr.msrb.gmra.mxu1 %vm66_vm6, %v284_v37 }
 0x74b   :  { %v304_v38 = vpop.f32.mrf.mxu1 }
 0x74c   :  { %v305_v39 = vadd.f32 %v786_v8, %v304_v38 }
 0x74e   :  { %v308_v40 = vrot.slane %v305_v39, 2 }
 0x750   :  { %330 = vrot.lane.b32.xlu0 %v308_v40, %s729_s7  ;;  %v310_v41 = vadd.f32 %v308_v40, %v796_v13 }
 0x752   :  { %v661_v42 = vmul.f32 -1.442695, %v310_v41 }
 0x754   :  { %698 = vpow2.f32 %v661_v42 }
 0x75a   :  { %v699_v43 = vpop.eup %698 }
 0x75b   :  { %v314_v44 = vadd.f32 1.0, %v699_v43 }
 0x75d   :  { %700 = vrcp.f32 %v314_v44  ;;  %v326_v50 = vand.u32 2147483648, %v314_v44  ;;  %vm320_vm1 = vweird.f32 %v314_v44  ;;  %v324_v51 = vand.u32 2147483647, %v314_v44 }
 0x75f   :  { %v327_v53 = vor.u32 1.1754944e-38, %v326_v50  ;;  %vm325_vm3 = vcmp.eq.f32.partialorder %v324_v51, 8.507059e+37 }
 0x763   :  { %v701_v45 = vpop.eup %700 }
 0x764   :  { %v316_v46 = vmul.f32 %v701_v45, %v314_v44  ;;  %vm321_vm15 = vweird.f32 %v701_v45 }
 0x765   :  { %vm322_vm2 = vmor %vm320_vm1, %vm321_vm15 }
 0x766   :  { %v317_v47 = vsub.f32 1.0, %v316_v46 }
 0x768   :  { %v318_v48 = vmul.f32 %v701_v45, %v317_v47 }
 0x76a   :  { %v319_v49 = vadd.f32 %v701_v45, %v318_v48 }
 0x76c   :  { %v323_v52 = vsel %vm322_vm2, %v701_v45, %v319_v49 }
 0x76d   :  { %v328_v55 = vsel %vm325_vm3, %v327_v53, %v323_v52 }
 0x76e   :  { %v340_v60 = vsub.f32 1.0, %v328_v55  ;;  %v348_v63 = vmul.f32 %v346_v61, %v328_v55 }
 0x7c2   :  { %v331_v54 = vpop.permute.xlu0 %330 }
 0x7c3   :  { %v333_v56 = vmul.f32 %v331_v54, %v328_v55 }
 0x7c5   :  { %335 = vrot.lane.b32.xlu1 %v333_v56, %s729_s7 }
 0x837   :  { %v336_v57 = vpop.permute.xlu1 %335 }
 0x838   :  { %v338_v58 = vadd.f32 %v336_v57, %v796_v13  ;;  %v21_v13 = vld [vmem:[%s913_s0 + $0x8] sm:$0xff] }
 0x839   :  { %652 = vmatmul.msk.f32.gmra.mxu0 %vm28_vm0, %v21_v13 }
 0x83a   :  { %702 = vtanh.f32 %v338_v58 }
 0x840   :  { %v703_v59 = vpop.eup %702 }
 0x841   :  { %342 = vrot.lane.b32.xlu2 %v703_v59, %s730_s2 }
 0x89b   :  { %v343_v62 = vpop.permute.xlu2 %342 }
 0x89c   :  { %v345_v0 = vmul.f32 %v343_v62, %v340_v60 }
 0x89e   :  { %v838_v1 = vadd.f32 %v348_v63, %v345_v0 }
 0x8a0   :  { %v357_v3 = vrot.slane %v838_v1, 6 }
 0x8a2   :  { %358 = vrot.lane.b32.xlu0 %v357_v3, %s730_s2 }
 0x8b6   :  { %v55_v7 = vpop.f32.mrf.mxu0 }
 0x8b7   :  { %v850_v9 = vadd.f32 %v793_v11, %v55_v7 }
 0x914   :  { %v359_v4 = vpop.permute.xlu0 %358 }
 0x915   :  { %663 = vmatmul.msk.f32.vlgmr.msrb.gmra.mxu2 %vm66_vm6, %v359_v4 }
 0x998   :  { %v379_v5 = vpop.f32.mrf.mxu2 }
 0x999   :  { %v380_v6 = vadd.f32 %v786_v8, %v379_v5 }
 0x99b   :  { %403 = vrot.lane.b32.xlu1 %v380_v6, %s729_s7  ;;  %v382_v10 = vadd.f32 %v380_v6, %v850_v9 }
 0x99d   :  { %v664_v12 = vmul.f32 -1.442695, %v382_v10 }
 0x99f   :  { %704 = vpow2.f32 %v664_v12 }
 0x9a5   :  { %v705_v14 = vpop.eup %704 }
 0x9a6   :  { %v386_v15 = vadd.f32 1.0, %v705_v14 }
 0x9a8   :  { %706 = vrcp.f32 %v386_v15  ;;  %v398_v21 = vand.u32 2147483648, %v386_v15  ;;  %vm392_vm4 = vweird.f32 %v386_v15  ;;  %v396_v22 = vand.u32 2147483647, %v386_v15 }
 0x9aa   :  { %v399_v11 = vor.u32 1.1754944e-38, %v398_v21  ;;  %vm397_vm8 = vcmp.eq.f32.partialorder %v396_v22, 8.507059e+37 }
 0x9ae   :  { %v707_v16 = vpop.eup %706 }
 0x9af   :  { %v388_v17 = vmul.f32 %v707_v16, %v386_v15  ;;  %vm393_vm0 = vweird.f32 %v707_v16 }
 0x9b0   :  { %vm394_vm7 = vmor %vm392_vm4, %vm393_vm0  ;;  %vm205_vm0 = vcmask 257026   ;;  %vm280_vm4 = vcmask 259076  }
 0x9b1   :  { %v389_v18 = vsub.f32 1.0, %v388_v17 }
 0x9b3   :  { %v390_v19 = vmul.f32 %v707_v16, %v389_v18 }
 0x9b5   :  { %v391_v20 = vadd.f32 %v707_v16, %v390_v19 }
 0x9b7   :  { %v395_v23 = vsel %vm394_vm7, %v707_v16, %v391_v20  ;;  %vm355_vm7 = vcmask 261126  }
 0x9b8   :  { %v400_v25 = vsel %vm397_vm8, %v399_v11, %v395_v23 }
 0x9b9   :  { %v413_v30 = vsub.f32 1.0, %v400_v25  ;;  %v420_v32 = vmul.f32 %v400_v25, %v357_v3 }
 0xa0d   :  { %v404_v24 = vpop.permute.xlu1 %403 }
 0xa0e   :  { %v406_v26 = vmul.f32 %v404_v24, %v400_v25 }
 0xa10   :  { %408 = vrot.lane.b32.xlu2 %v406_v26, %s729_s7 }
 0xa6a   :  { %v409_v27 = vpop.permute.xlu2 %408 }
 0xa6b   :  { %v411_v28 = vadd.f32 %v409_v27, %v850_v9 }
 0xa6d   :  { %708 = vtanh.f32 %v411_v28 }
 0xa73   :  { %v709_v29 = vpop.eup %708 }
 0xa74   :  { %415 = vrot.lane.b32.xlu0 %v709_v29, %s730_s2 }
 0xae6   :  { %v416_v31 = vpop.permute.xlu0 %415 }
 0xae7   :  { %v418_v33 = vmul.f32 %v416_v31, %v413_v30 }
 0xae9   :  { %v421_v34 = vadd.f32 %v420_v32, %v418_v33 }
 0xaeb   :  { %423 = vrot.lane.b32.xlu1 %v421_v34, %s730_s2  ;;  %v489_v52 = vrot.slane %v421_v34, 6 }
 0xb5d   :  { %v424_v36 = vpop.permute.xlu1 %423 }
 0xb5e   :  { %665 = vst.msk [vmem:[%s916_s5 + $0x8] sm:$0x3] %vm133_vm5, %v424_v36  ;;  %666 = vmatmul.msk.f32.vlgmr.msrb.gmra.mxu3 %vm66_vm6, %v424_v36 }
 0xbe1   :  { %v447_v37 = vpop.f32.mrf.mxu3 }
 0xbe2   :  { %v448_v38 = vadd.f32 %v786_v8, %v447_v37 }
 0xbe4   :  { %v451_v39 = vrot.slane %v448_v38, 6 }
 0xbe6   :  { %v453_v40 = vadd.f32 %v451_v39, %v850_v9  ;;  %473 = vrot.lane.b32.xlu2 %v451_v39, %s729_s7 }
 0xbe8   :  { %v667_v41 = vmul.f32 -1.442695, %v453_v40 }
 0xbea   :  { %710 = vpow2.f32 %v667_v41 }
 0xbf0   :  { %v711_v42 = vpop.eup %710 }
 0xbf1   :  { %v457_v43 = vadd.f32 1.0, %v711_v42 }
 0xbf3   :  { %712 = vrcp.f32 %v457_v43  ;;  %v469_v47 = vand.u32 2147483648, %v457_v43  ;;  %v467_v49 = vand.u32 2147483647, %v457_v43  ;;  %vm463_vm9 = vweird.f32 %v457_v43 }
 0xbf5   :  { %v470_v51 = vor.u32 1.1754944e-38, %v469_v47  ;;  %vm468_vm11 = vcmp.eq.f32.partialorder %v467_v49, 8.507059e+37 }
 0xbf9   :  { %v713_v44 = vpop.eup %712 }
 0xbfa   :  { %v459_v45 = vmul.f32 %v713_v44, %v457_v43  ;;  %vm464_vm5 = vweird.f32 %v713_v44 }
 0xbfb   :  { %vm465_vm10 = vmor %vm463_vm9, %vm464_vm5 }
 0xbfc   :  { %v460_v46 = vsub.f32 1.0, %v459_v45 }
 0xbfe   :  { %v461_v48 = vmul.f32 %v713_v44, %v460_v46 }
 0xc00   :  { %v462_v50 = vadd.f32 %v713_v44, %v461_v48 }
 0xc02   :  { %v466_v53 = vsel %vm465_vm10, %v713_v44, %v462_v50 }
 0xc03   :  { %v471_v54 = vsel %vm468_vm11, %v470_v51, %v466_v53 }
 0xc04   :  { %v491_v55 = vmul.f32 %v489_v52, %v471_v54  ;;  %v483_v61 = vsub.f32 1.0, %v471_v54 }
 0xc40   :  { %v474_v56 = vpop.permute.xlu2 %473 }
 0xc41   :  { %v476_v57 = vmul.f32 %v474_v56, %v471_v54 }
 0xc43   :  { %478 = vrot.lane.b32.xlu0 %v476_v57, %s729_s7 }
 0xcb5   :  { %v479_v58 = vpop.permute.xlu0 %478 }
 0xcb6   :  { %v481_v59 = vadd.f32 %v479_v58, %v850_v9 }
 0xcb8   :  { %714 = vtanh.f32 %v481_v59 }
 0xcbe   :  { %v715_v60 = vpop.eup %714 }
 0xcbf   :  { %485 = vrot.lane.b32.xlu1 %v715_v60, %s730_s2 }
 0xd31   :  { %v486_v62 = vpop.permute.xlu1 %485 }
 0xd32   :  { %v488_v63 = vmul.f32 %v486_v62, %v483_v61 }
 0xd34   :  { %v492_v0 = vadd.f32 %v491_v55, %v488_v63 }
 0xd36   :  { %v499_v3 = vrot.slane %v492_v0, 2  ;;  %v563_v30 = vrot.slane %v492_v0, 6 }
 0xd38   :  { %500 = vrot.lane.b32.xlu2 %v499_v3, %s730_s2 }
 0xd92   :  { %v501_v13 = vpop.permute.xlu2 %500 }
 0xd93   :  { %669 = vmatmul.msk.f32.vlgmr.msrb.gmra.mxu0 %vm66_vm6, %v501_v13 }
 0xe10   :  { %v521_v4 = vpop.f32.mrf.mxu0 }
 0xe11   :  { %v522_v5 = vadd.f32 %v786_v8, %v521_v4 }
 0xe13   :  { %v525_v6 = vrot.slane %v522_v5, 4 }
 0xe15   :  { %547 = vrot.lane.b32.xlu0 %v525_v6, %s729_s7  ;;  %v527_v7 = vadd.f32 %v525_v6, %v850_v9 }
 0xe17   :  { %v670_v10 = vmul.f32 -1.442695, %v527_v7 }
 0xe19   :  { %716 = vpow2.f32 %v670_v10 }
 0xe1f   :  { %v717_v12 = vpop.eup %716 }
 0xe20   :  { %v531_v14 = vadd.f32 1.0, %v717_v12 }
 0xe22   :  { %718 = vrcp.f32 %v531_v14  ;;  %v543_v20 = vand.u32 2147483648, %v531_v14  ;;  %vm537_vm13 = vweird.f32 %v531_v14  ;;  %v541_v21 = vand.u32 2147483647, %v531_v14 }
 0xe24   :  { %v544_v23 = vor.u32 1.1754944e-38, %v543_v20  ;;  %vm542_vm15 = vcmp.eq.f32.partialorder %v541_v21, 8.507059e+37 }
 0xe28   :  { %v719_v15 = vpop.eup %718 }
 0xe29   :  { %v533_v16 = vmul.f32 %v719_v15, %v531_v14  ;;  %vm538_vm12 = vweird.f32 %v719_v15 }
 0xe2a   :  { %vm539_vm14 = vmor %vm537_vm13, %vm538_vm12 }
 0xe2b   :  { %v534_v17 = vsub.f32 1.0, %v533_v16 }
 0xe2d   :  { %v535_v18 = vmul.f32 %v719_v15, %v534_v17 }
 0xe2f   :  { %v536_v19 = vadd.f32 %v719_v15, %v535_v18 }
 0xe31   :  { %v540_v22 = vsel %vm539_vm14, %v719_v15, %v536_v19 }
 0xe32   :  { %v545_v24 = vsel %vm542_vm15, %v544_v23, %v540_v22 }
 0xe33   :  { %v557_v29 = vsub.f32 1.0, %v545_v24  ;;  %v565_v32 = vmul.f32 %v563_v30, %v545_v24 }
 0xe87   :  { %v548_v11 = vpop.permute.xlu0 %547 }
 0xe88   :  { %v550_v25 = vmul.f32 %v548_v11, %v545_v24 }
 0xe8a   :  { %552 = vrot.lane.b32.xlu1 %v550_v25, %s729_s7 }
 0xefc   :  { %v553_v26 = vpop.permute.xlu1 %552 }
 0xefd   :  { %v555_v27 = vadd.f32 %v553_v26, %v850_v9 }
 0xeff   :  { %720 = vtanh.f32 %v555_v27 }
 0xf05   :  { %v721_v28 = vpop.eup %720 }
 0xf06   :  { %559 = vrot.lane.b32.xlu2 %v721_v28, %s730_s2 }
 0xf60   :  { %v560_v31 = vpop.permute.xlu2 %559 }
 0xf61   :  { %v562_v33 = vmul.f32 %v560_v31, %v557_v29 }
 0xf63   :  { %v566_v34 = vadd.f32 %v565_v32, %v562_v33 }
 0xf65   :  { %v573_v36 = vrot.slane %v566_v34, 4 }
 0xf67   :  { %574 = vrot.lane.b32.xlu0 %v573_v36, %s730_s2 }
 0xfd9   :  { %v575_v37 = vpop.permute.xlu0 %574 }
 0xfda   :  { %672 = vmatmul.msk.f32.vlgmr.msra.gmra.mxu1 %vm66_vm6, %v575_v37 }
0x1057   :  { %v595_v38 = vpop.f32.mrf.mxu1 }
0x1058   :  { %v596_v39 = vadd.f32 %v786_v8, %v595_v38 }
0x105a   :  { %v599_v40 = vrot.slane %v596_v39, 2 }
0x105c   :  { %621 = vrot.lane.b32.xlu1 %v599_v40, %s729_s7  ;;  %v601_v41 = vadd.f32 %v599_v40, %v850_v9 }
0x105e   :  { %v673_v42 = vmul.f32 -1.442695, %v601_v41 }
0x1060   :  { %722 = vpow2.f32 %v673_v42 }
0x1064   :  { %201 = vrot.lane.b32.xlu1 %v814_v2, %s730_s2 }
0x1066   :  { %v723_v43 = vpop.eup %722 }
0x1067   :  { %v605_v44 = vadd.f32 1.0, %v723_v43 }
0x1069   :  { %724 = vrcp.f32 %v605_v44  ;;  %v617_v49 = vand.u32 2147483648, %v605_v44  ;;  %vm611_vm1 = vweird.f32 %v605_v44  ;;  %v615_v50 = vand.u32 2147483647, %v605_v44 }
0x106b   :  { %v618_v51 = vor.u32 1.1754944e-38, %v617_v49  ;;  %vm616_vm3 = vcmp.eq.f32.partialorder %v615_v50, 8.507059e+37 }
0x106c   :  { %494 = vrot.lane.b32.xlu1 %v492_v0, %s730_s2 }
0x106f   :  { %v725_v45 = vpop.eup %724 }
0x1070   :  { %v607_v46 = vmul.f32 %v725_v45, %v605_v44  ;;  %vm612_vm6 = vweird.f32 %v725_v45 }
0x1071   :  { %vm613_vm2 = vmor %vm611_vm1, %vm612_vm6 }
0x1072   :  { %v608_v47 = vsub.f32 1.0, %v607_v46 }
0x1074   :  { %v609_v48 = vmul.f32 %v725_v45, %v608_v47 }
0x1076   :  { %v610_v8 = vadd.f32 %v725_v45, %v609_v48 }
0x1078   :  { %v614_v2 = vsel %vm613_vm2, %v725_v45, %v610_v8 }
0x1079   :  { %v619_v53 = vsel %vm616_vm3, %v618_v51, %v614_v2 }
0x107a   :  { %v631_v61 = vsub.f32 1.0, %v619_v53 }
0x10ce   :  { %v622_v52 = vpop.permute.xlu1 %621 }
0x10cf   :  { %v624_v54 = vmul.f32 %v622_v52, %v619_v53 }
0x10d1   :  { %626 = vrot.lane.b32.xlu2 %v624_v54, %s729_s7 }
0x10d6   :  { %v202_v55 = vpop.permute.xlu1 %201 }
0x10d7   :  { %656 = vst.msk [vmem:[%s916_s5] sm:$0xc] %vm205_vm0, %v202_v55 }
0x10d9   :  { %276 = vrot.lane.b32.xlu2 %v826_v35, %s730_s2 }
0x10de   :  { %v495_v56 = vpop.permute.xlu1 %494 }
0x10df   :  { %668 = vst.msk [vmem:[%s916_s5 + $0x8] sm:$0xc] %vm205_vm0, %v495_v56 }
0x10e1   :  { %568 = vrot.lane.b32.xlu2 %v566_v34, %s730_s2 }
0x112b   :  { %v627_v57 = vpop.permute.xlu2 %626 }
0x112c   :  { %v629_v58 = vadd.f32 %v627_v57, %v850_v9  ;;  %v637_v9 = vrot.slane %v566_v34, 6 }
0x112e   :  { %726 = vtanh.f32 %v629_v58  ;;  %v639_v63 = vmul.f32 %v637_v9, %v619_v53 }
0x1133   :  { %v277_v59 = vpop.permute.xlu2 %276 }
0x1134   :  { %v727_v60 = vpop.eup %726  ;;  %659 = vst.msk [vmem:[%s916_s5] sm:$0x30] %vm280_vm4, %v277_v59 }
0x1135   :  { %633 = vrot.lane.b32.xlu0 %v727_v60, %s730_s2 }
0x113b   :  { %v569_v35 = vpop.permute.xlu2 %568 }
0x113c   :  { %671 = vst.msk [vmem:[%s916_s5 + $0x8] sm:$0x30] %vm280_vm4, %v569_v35 }
0x113d   :  { %351 = vrot.lane.b32.xlu0 %v838_v1, %s730_s2 }
0x11a7   :  { %v634_v62 = vpop.permute.xlu0 %633 }
0x11a8   :  { %v636_v0 = vmul.f32 %v634_v62, %v631_v61 }
0x11aa   :  { %v640_v3 = vadd.f32 %v639_v63, %v636_v0 }
0x11ac   :  { %642 = vrot.lane.b32.xlu0 %v640_v3, %s730_s2 }
0x11af   :  { %v352_v13 = vpop.permute.xlu0 %351 }
0x11b0   :  { %662 = vst.msk [vmem:[%s916_s5] sm:$0xc0] %vm355_vm7, %v352_v13 }
0x121e   :  { %v643_v4 = vpop.permute.xlu0 %642 }
0x121f   :  { %674 = vst.msk [vmem:[%s916_s5 + $0x8] sm:$0xc0] %vm355_vm7, %v643_v4 }

</bundles_post_ra>
